<compile_context>
chip_gen: v7x
topology: tpu7x:2x2x1
jax: 0.10.0
libtpu: 0.0.40
codegen_flags: <defaults>
</compile_context>

<pallas_src>
import functools

import jax
import jax.numpy as jnp
import numpy as np
from jax.experimental import pallas as pl
from jax.experimental.pallas import tpu as pltpu

# ---------------- model hyperparameters (img_size=(4,16,16), brand head) -----
C, H, W = 4, 16, 16
D_IN = C * H * W          # 1024
HIDDEN = 128
LATENT = 16
N_SIGNAL = 4              # sup_signal == 'brand'
THRESHOLD_VAL = 0.05
PACK_W = 128              # lane-dense packed width for small outputs
MAX_TILE = 256            # batch-tile rows for the grid (multiple of 16)

# --------- small-parameter slab layout (f32, 128 lanes, 8-aligned rows) -------
R_DW1 = 0                 # rows [0,16):    dw1   (LATENT, HIDDEN)
R_EW2M = 16               # rows [16,144):  ew2 mean cols  (HIDDEN, LATENT) @ lanes [0,16)
R_EW2V = 144              # rows [144,272): ew2 logvar cols (HIDDEN, LATENT) @ lanes [0,16)
R_RW = 272                # rows [272,288): rw    (LATENT, N_SIGNAL) @ lanes [0,4)
R_EB1 = 288               # eb1  (1, HIDDEN)
R_DB1 = 296               # db1  (1, HIDDEN)
R_EB2M = 304              # eb2 mean   (1, LATENT) @ lanes [0,16)
R_EB2V = 312              # eb2 logvar (1, LATENT) @ lanes [0,16)
R_RB = 320                # rb   (1, N_SIGNAL)    @ lanes [0,4)
SLAB_ROWS = 328           # multiple of 8


def vae_kernel(x_ref, ew1_ref, dw2_ref, db2_ref, slab_ref,
               recon_ref, ml_ref, vs_ref,
               mean_scr, kl_scr,
               *, batch_true, tile_rows, batch_pad, threshold_val):
    """One grid step = one batch tile. Weights are VMEM-resident (constant maps)."""
    t = pl.program_id(0)
    n_tiles = pl.num_programs(0)

    @pl.when(t == 0)
    def _init():
        kl_scr[...] = jnp.zeros_like(kl_scr)

    # ---------------- encoder ----------------
    x = x_ref[...]                                               # (TB, D_IN) bf16
    h = jnp.dot(x, ew1_ref[...], preferred_element_type=jnp.float32)
    h = jnp.maximum(h + slab_ref[R_EB1:R_EB1 + 1, :], 0.0)       # (TB, HIDDEN) f32

    ew2m = slab_ref[R_EW2M:R_EW2M + HIDDEN, 0:LATENT]            # (HIDDEN, LATENT)
    ew2v = slab_ref[R_EW2V:R_EW2V + HIDDEN, 0:LATENT]
    mean = (jnp.dot(h, ew2m, preferred_element_type=jnp.float32)
            + slab_ref[R_EB2M:R_EB2M + 1, 0:LATENT])             # (TB, LATENT)
    logvar = (jnp.dot(h, ew2v, preferred_element_type=jnp.float32)
              + slab_ref[R_EB2V:R_EB2V + 1, 0:LATENT])           # (TB, LATENT)

    # ---------------- reparameterize (eval mode) ----------------
    z = mean

    # ---------------- decoder ----------------
    dw1 = slab_ref[R_DW1:R_DW1 + LATENT, :]                      # (LATENT, HIDDEN)
    hd = jnp.dot(z, dw1, preferred_element_type=jnp.float32) + slab_ref[R_DB1:R_DB1 + 1, :]
    hd = jnp.maximum(hd, 0.0)
    logits = (jnp.dot(hd.astype(jnp.bfloat16), dw2_ref[...],
                      preferred_element_type=jnp.float32) + db2_ref[...])
    # sigmoid = 1 / (1 + exp(-x)): exp + approx reciprocal both on the EUP slot.
    recon_ref[...] = pl.reciprocal(1.0 + jnp.exp(-logits), approx=True)

    # ------------- per-tile small outputs (lane-dense 128-wide slab) ----------
    ml_ref[...] = jnp.concatenate(
        [mean, logvar,
         jnp.zeros((tile_rows, PACK_W - 2 * LATENT), jnp.float32)], axis=-1)

    # ------------- full-batch KL accumulation (mask padded rows) --------------
    row = jax.lax.broadcasted_iota(jnp.int32, (tile_rows, 1), 0) + t * tile_rows
    valid = (row < batch_true).astype(jnp.float32)               # (TB, 1)
    kl = 0.5 * (-1.0 - logvar + mean * mean + jnp.exp(logvar))   # (TB, LATENT)
    kl_scr[...] += jnp.sum(kl * valid, axis=0, keepdims=True)    # (1, LATENT)

    # stash this tile's means for the last-step regression over the whole batch
    off = pl.multiple_of(t * tile_rows, tile_rows)
    mean_scr[pl.ds(off, tile_rows), :] = mean

    # ------------- last step: visual-attribute mask + regression head --------
    @pl.when(t == n_tiles - 1)
    def _finalize():
        latent_kl = kl_scr[...] * (1.0 / batch_true)             # (1, LATENT)
        va_row = jnp.where(latent_kl < threshold_val, 0.0, 1.0)  # ties keep 1
        va = jnp.broadcast_to(va_row, (batch_pad, LATENT))
        mean_all = mean_scr[...]                                 # (B_pad, LATENT)
        rw = slab_ref[R_RW:R_RW + LATENT, 0:N_SIGNAL]            # (LATENT, N_SIGNAL)
        sig = (jnp.dot(mean_all * va, rw, preferred_element_type=jnp.float32)
               + slab_ref[R_RB:R_RB + 1, 0:N_SIGNAL])            # (B_pad, N_SIGNAL)
        vs_ref[...] = jnp.concatenate(
            [va, sig,
             jnp.zeros((batch_pad, PACK_W - LATENT - N_SIGNAL), jnp.float32)],
            axis=-1)


# ---------------------------- parameters -------------------------------------
def init_params(key):
    """Deterministic synthetic parameters (shapes implied by the module)."""
    ks = jax.random.split(key, 5)
    f32 = jnp.float32

    def lin(k, fan_in, fan_out):
        scale = 1.0 / np.sqrt(fan_in)
        w = jax.random.normal(k, (fan_in, fan_out), f32) * scale
        b = jnp.zeros((fan_out,), f32)
        return w, b

    ew1, eb1 = lin(ks[0], D_IN, HIDDEN)
    ew2, eb2 = lin(ks[1], HIDDEN, 2 * LATENT)
    dw1, db1 = lin(ks[2], LATENT, HIDDEN)
    dw2, db2 = lin(ks[3], HIDDEN, D_IN)
    rw, rb = lin(ks[4], LATENT, N_SIGNAL)
    return dict(ew1=ew1, eb1=eb1, ew2=ew2, eb2=eb2, dw1=dw1, db1=db1,
                dw2=dw2, db2=db2, rw=rw, rb=rb)


def pack_params(p):
    """One-time packing into the kernel's operand layout (done outside jit)."""
    slab = np.zeros((SLAB_ROWS, PACK_W), np.float32)
    slab[R_DW1:R_DW1 + LATENT, :HIDDEN] = np.asarray(p["dw1"])
    slab[R_EW2M:R_EW2M + HIDDEN, :LATENT] = np.asarray(p["ew2"][:, :LATENT])
    slab[R_EW2V:R_EW2V + HIDDEN, :LATENT] = np.asarray(p["ew2"][:, LATENT:])
    slab[R_RW:R_RW + LATENT, :N_SIGNAL] = np.asarray(p["rw"])
    slab[R_EB1, :HIDDEN] = np.asarray(p["eb1"])
    slab[R_DB1, :HIDDEN] = np.asarray(p["db1"])
    slab[R_EB2M, :LATENT] = np.asarray(p["eb2"][:LATENT])
    slab[R_EB2V, :LATENT] = np.asarray(p["eb2"][LATENT:])
    slab[R_RB, :N_SIGNAL] = np.asarray(p["rb"])
    return dict(
        ew1=jnp.asarray(p["ew1"], jnp.bfloat16),                 # (D_IN, HIDDEN)
        dw2=jnp.asarray(p["dw2"], jnp.bfloat16),                 # (HIDDEN, D_IN)
        db2=jnp.asarray(p["db2"]).reshape(1, D_IN).astype(jnp.float32),
        slab=jnp.asarray(slab),
    )


# ---------------------------- wrapper -----------------------------------------
def _tiling(batch):
    if batch <= MAX_TILE:
        tile = max(8, ((batch + 7) // 8) * 8)
        return tile, 1
    n_tiles = (batch + MAX_TILE - 1) // MAX_TILE
    return MAX_TILE, n_tiles


@functools.partial(jax.jit, static_argnames=("threshold_val",))
def vae_forward(x_nchw, kparams, threshold_val=THRESHOLD_VAL):
    """Fused Pallas VAE forward. Returns (reconstruct, (mean, logvar),
    latent_sample, signal_pred, visual_attributes), like the PyTorch module."""
    b = x_nchw.shape[0]
    tile, n_tiles = _tiling(b)
    b_pad = tile * n_tiles

    x_flat = x_nchw.reshape(b, -1).astype(jnp.float32)
    x_pad = jnp.pad(x_flat, ((0, b_pad - b), (0, 0))).astype(jnp.bfloat16)

    kernel = functools.partial(
        vae_kernel, batch_true=b, tile_rows=tile, batch_pad=b_pad,
        threshold_val=float(threshold_val))

    const = lambda t: (0, 0)
    grid_spec = pltpu.PrefetchScalarGridSpec(
        num_scalar_prefetch=0,
        grid=(n_tiles,),
        in_specs=[
            pl.BlockSpec((tile, D_IN), lambda t: (t, 0)),        # x (bf16), streamed
            pl.BlockSpec((D_IN, HIDDEN), const),                 # ew1 (bf16), resident
            pl.BlockSpec((HIDDEN, D_IN), const),                 # dw2 (bf16), resident
            pl.BlockSpec((1, D_IN), const),                      # db2 (f32), resident
            pl.BlockSpec((SLAB_ROWS, PACK_W), const),            # small-param slab
        ],
        out_specs=(
            pl.BlockSpec((tile, D_IN), lambda t: (t, 0)),        # reconstruct
            pl.BlockSpec((tile, PACK_W), lambda t: (t, 0)),      # mean|logvar packed
            pl.BlockSpec((b_pad, PACK_W), const),                # va|signal packed
        ),
        scratch_shapes=[
            pltpu.VMEM((b_pad, LATENT), jnp.float32),            # per-row means
            pltpu.VMEM((1, LATENT), jnp.float32),                # KL accumulator
        ],
    )

    out_shapes = (
        jax.ShapeDtypeStruct((b_pad, D_IN), jnp.float32),
        jax.ShapeDtypeStruct((b_pad, PACK_W), jnp.float32),
        jax.ShapeDtypeStruct((b_pad, PACK_W), jnp.float32),
    )

    recon_flat, ml, vs = pl.pallas_call(
        kernel,
        out_shape=out_shapes,
        grid_spec=grid_spec,
        compiler_params=pltpu.CompilerParams(
            # Batch axis stays "arbitrary": the visual-attribute mask is a
            # full-batch KL reduction consumed by the regression head, so tiles
            # accumulate sequentially into kl_scr / mean_scr.
            dimension_semantics=("arbitrary",)),
    )(x_pad, kparams["ew1"], kparams["dw2"], kparams["db2"], kparams["slab"])

    reconstruct = recon_flat[:b].reshape(b, C, H, W)
    mean = ml[:b, 0:LATENT]
    logvar = ml[:b, LATENT:2 * LATENT]
    visual_attributes = vs[:b, 0:LATENT]
    signal_pred = vs[:b, LATENT:LATENT + N_SIGNAL]
    latent_sample = mean                                         # eval-mode reparam
    return reconstruct, (mean, logvar), latent_sample, signal_pred, visual_attributes


# ------------------------ pure-JAX reference ----------------------------------
def vae_reference(x_nchw, params, threshold_val=THRESHOLD_VAL):
    """Mirrors the kernel's cast points (bf16 x / bf16 weights) in plain JAX."""
    b = x_nchw.shape[0]
    hp = jax.lax.Precision.HIGHEST
    f32 = jnp.float32
    x = x_nchw.reshape(b, -1).astype(jnp.bfloat16).astype(f32)
    ew1 = params["ew1"].astype(jnp.bfloat16).astype(f32)
    dw2 = params["dw2"].astype(jnp.bfloat16).astype(f32)
    h = jnp.maximum(jnp.dot(x, ew1, precision=hp) + params["eb1"], 0.0)
    ml = jnp.dot(h, params["ew2"], precision=hp) + params["eb2"]
    mean, logvar = ml[:, :LATENT], ml[:, LATENT:]
    hd = jnp.maximum(jnp.dot(mean, params["dw1"], precision=hp) + params["db1"], 0.0)
    hd = hd.astype(jnp.bfloat16).astype(f32)
    recon = jax.nn.sigmoid(jnp.dot(hd, dw2, precision=hp) + params["db2"])
    kl = 0.5 * (-1.0 - logvar + mean ** 2 + jnp.exp(logvar)).mean(axis=0)
    va = jnp.broadcast_to(jnp.where(kl < threshold_val, 0.0, 1.0)[None, :], (b, LATENT))
    sig = jnp.dot(mean * va, params["rw"], precision=hp) + params["rb"]
    return recon.reshape(b, C, H, W), mean, logvar, sig, va


if __name__ == "__main__":
    key = jax.random.PRNGKey(0)
    k_x, k_p, k_x2 = jax.random.split(key, 3)

    params = init_params(k_p)
    kparams = pack_params(params)

    # ---- spec-sized run (batch=2; single grid step) ----
    x = jax.random.normal(k_x, (2, C, H, W), jnp.float32)
    outs = jax.block_until_ready(vae_forward(x, kparams))
    recon, (mean, logvar), z, sig, va = outs

    r_recon, r_mean, r_logvar, _, _ = vae_reference(x, params)

    assert recon.shape == (2, C, H, W)
    assert mean.shape == (2, LATENT) and logvar.shape == (2, LATENT)
    assert z.shape == (2, LATENT) and sig.shape == (2, N_SIGNAL)
    assert va.shape == (2, LATENT)
    assert bool(jnp.all(jnp.isfinite(recon)))
    assert bool(jnp.all((va == 0.0) | (va == 1.0)))
    assert np.allclose(np.asarray(recon), np.asarray(r_recon), atol=5e-2, rtol=5e-2)
    assert np.allclose(np.asarray(mean), np.asarray(r_mean), atol=5e-2, rtol=5e-2)
    assert np.allclose(np.asarray(logvar), np.asarray(r_logvar), atol=5e-2, rtol=5e-2)
    sig_chk = jnp.dot(mean * va, params["rw"],
                      precision=jax.lax.Precision.HIGHEST) + params["rb"]
    assert np.allclose(np.asarray(sig), np.asarray(sig_chk), atol=5e-3, rtol=5e-3)

    # ---- larger batch: exercises multi-tile grid, resident weights, padding ----
    xb = jax.random.normal(k_x2, (300, C, H, W), jnp.float32)
    outs_b = jax.block_until_ready(vae_forward(xb, kparams))
    recon_b, (mean_b, logvar_b), _, sig_b, va_b = outs_b
    rb_ = vae_reference(xb, params)
    assert recon_b.shape == (300, C, H, W)
    assert bool(jnp.all((va_b == 0.0) | (va_b == 1.0)))
    assert np.allclose(np.asarray(recon_b), np.asarray(rb_[0]), atol=5e-2, rtol=5e-2)
    assert np.allclose(np.asarray(mean_b), np.asarray(rb_[1]), atol=5e-2, rtol=5e-2)
    sig_chk_b = jnp.dot(mean_b * va_b, params["rw"],
                        precision=jax.lax.Precision.HIGHEST) + params["rb"]
    assert np.allclose(np.asarray(sig_b), np.asarray(sig_chk_b), atol=5e-3, rtol=5e-3)

    print("KERNEL_OK")
</pallas_src>

<mosaic_0001>
module attributes {stable_mosaic.version = 11 : i64} {
  func.func @vae_kernel(%arg0: i32, %arg1: memref<8x1024xbf16, #tpu.memory_space<vmem>>, %arg2: memref<1024x128xbf16, #tpu.memory_space<vmem>>, %arg3: memref<128x1024xbf16, #tpu.memory_space<vmem>>, %arg4: memref<1x1024xf32, #tpu.memory_space<vmem>>, %arg5: memref<328x128xf32, #tpu.memory_space<vmem>>, %arg6: memref<8x1024xf32, #tpu.memory_space<vmem>>, %arg7: memref<8x128xf32, #tpu.memory_space<vmem>>, %arg8: memref<8x128xf32, #tpu.memory_space<vmem>>, %arg9: memref<8x16xf32, #tpu.memory_space<vmem>>, %arg10: memref<1x16xf32, #tpu.memory_space<vmem>>) attributes {dimension_semantics = [#tpu.dimension_semantics<arbitrary>], iteration_bounds = array<i64: 1>, scalar_prefetch = 0 : i64, scratch_operands = 2 : i64, tpu.core_type = #tpu.core_type<tc>, window_params = [{transform_indices = @transform_0, window_bounds = array<i64: 8, 1024>}, {pipeline_mode = #tpu.pipeline_mode<synchronous>, transform_indices = @transform_1, window_bounds = array<i64: 1024, 128>}, {pipeline_mode = #tpu.pipeline_mode<synchronous>, transform_indices = @transform_2, window_bounds = array<i64: 128, 1024>}, {pipeline_mode = #tpu.pipeline_mode<synchronous>, transform_indices = @transform_3, window_bounds = array<i64: 1, 1024>}, {pipeline_mode = #tpu.pipeline_mode<synchronous>, transform_indices = @transform_4, window_bounds = array<i64: 328, 128>}, {transform_indices = @transform_5, window_bounds = array<i64: 8, 1024>}, {transform_indices = @transform_6, window_bounds = array<i64: 8, 128>}, {pipeline_mode = #tpu.pipeline_mode<synchronous>, transform_indices = @transform_7, window_bounds = array<i64: 8, 128>}]} {
    %c0_i32 = arith.constant 0 : i32
    %0 = arith.cmpi eq, %arg0, %c0_i32 : i32
    %1 = arith.extui %0 : i1 to i32
    %c0_i32_0 = arith.constant 0 : i32
    %2 = arith.cmpi ne, %1, %c0_i32_0 : i32
    scf.if %2 {
      %cst_40 = arith.constant 0.000000e+00 : f32
      %74 = vector.broadcast %cst_40 : f32 to vector<1x16xf32>
      %c0_41 = arith.constant 0 : index
      %c0_42 = arith.constant 0 : index
      %75 = vector.load %arg10[%c0_41, %c0_42] : memref<1x16xf32, #tpu.memory_space<vmem>>, vector<1x16xf32>
      tpu.vector_store %arg10[%c0_41, %c0_42], %74 {strides = array<i32>} : memref<1x16xf32, #tpu.memory_space<vmem>>, vector<1x16xf32>,
    } else {
    }
    %c0 = arith.constant 0 : index
    %c0_1 = arith.constant 0 : index
    %3 = vector.load %arg1[%c0, %c0_1] : memref<8x1024xbf16, #tpu.memory_space<vmem>>, vector<8x1024xbf16>
    %c0_2 = arith.constant 0 : index
    %c0_3 = arith.constant 0 : index
    %4 = vector.load %arg2[%c0_2, %c0_3] : memref<1024x128xbf16, #tpu.memory_space<vmem>>, vector<1024x128xbf16>
    %cst = arith.constant dense<0.000000e+00> : vector<8x128xf32>
    %5 = tpu.matmul %3, %4, %cst {dimension_numbers = #tpu.dot_dimension_numbers<[1], [0], [0], [1], [0, 0, 1, 1], [], []>} : vector<8x1024xbf16>, vector<1024x128xbf16>, vector<8x128xf32> -> vector<8x128xf32>
    %c288 = arith.constant 288 : index
    %c0_4 = arith.constant 0 : index
    %6 = vector.load %arg5[%c288, %c0_4] : memref<328x128xf32, #tpu.memory_space<vmem>>, vector<1x128xf32>
    %7 = vector.broadcast %6 : vector<1x128xf32> to vector<8x128xf32>
    %8 = arith.addf %5, %7 : vector<8x128xf32>
    %cst_5 = arith.constant 0.000000e+00 : f32
    %9 = vector.broadcast %cst_5 : f32 to vector<8x128xf32>
    %10 = arith.maximumf %8, %9 : vector<8x128xf32>
    %c16 = arith.constant 16 : index
    %c0_6 = arith.constant 0 : index
    %11 = vector.load %arg5[%c16, %c0_6] : memref<328x128xf32, #tpu.memory_space<vmem>>, vector<128x16xf32>
    %c144 = arith.constant 144 : index
    %c0_7 = arith.constant 0 : index
    %12 = vector.load %arg5[%c144, %c0_7] : memref<328x128xf32, #tpu.memory_space<vmem>>, vector<128x16xf32>
    %cst_8 = arith.constant dense<0.000000e+00> : vector<8x16xf32>
    %13 = tpu.matmul %10, %11, %cst_8 {dimension_numbers = #tpu.dot_dimension_numbers<[1], [0], [0], [1], [0, 0, 1, 1], [], []>} : vector<8x128xf32>, vector<128x16xf32>, vector<8x16xf32> -> vector<8x16xf32>
    %c304 = arith.constant 304 : index
    %c0_9 = arith.constant 0 : index
    %14 = vector.load %arg5[%c304, %c0_9] : memref<328x128xf32, #tpu.memory_space<vmem>>, vector<1x16xf32>
    %15 = vector.broadcast %14 : vector<1x16xf32> to vector<8x16xf32>
    %16 = arith.addf %13, %15 : vector<8x16xf32>
    %cst_10 = arith.constant dense<0.000000e+00> : vector<8x16xf32>
    %17 = tpu.matmul %10, %12, %cst_10 {dimension_numbers = #tpu.dot_dimension_numbers<[1], [0], [0], [1], [0, 0, 1, 1], [], []>} : vector<8x128xf32>, vector<128x16xf32>, vector<8x16xf32> -> vector<8x16xf32>
    %c312 = arith.constant 312 : index
    %c0_11 = arith.constant 0 : index
    %18 = vector.load %arg5[%c312, %c0_11] : memref<328x128xf32, #tpu.memory_space<vmem>>, vector<1x16xf32>
    %19 = vector.broadcast %18 : vector<1x16xf32> to vector<8x16xf32>
    %20 = arith.addf %17, %19 : vector<8x16xf32>
    %c0_12 = arith.constant 0 : index
    %c0_13 = arith.constant 0 : index
    %21 = vector.load %arg5[%c0_12, %c0_13] : memref<328x128xf32, #tpu.memory_space<vmem>>, vector<16x128xf32>
    %cst_14 = arith.constant dense<0.000000e+00> : vector<8x128xf32>
    %22 = tpu.matmul %16, %21, %cst_14 {dimension_numbers = #tpu.dot_dimension_numbers<[1], [0], [0], [1], [0, 0, 1, 1], [], []>} : vector<8x16xf32>, vector<16x128xf32>, vector<8x128xf32> -> vector<8x128xf32>
    %c296 = arith.constant 296 : index
    %c0_15 = arith.constant 0 : index
    %23 = vector.load %arg5[%c296, %c0_15] : memref<328x128xf32, #tpu.memory_space<vmem>>, vector<1x128xf32>
    %24 = vector.broadcast %23 : vector<1x128xf32> to vector<8x128xf32>
    %25 = arith.addf %22, %24 : vector<8x128xf32>
    %cst_16 = arith.constant 0.000000e+00 : f32
    %26 = vector.broadcast %cst_16 : f32 to vector<8x128xf32>
    %27 = arith.maximumf %25, %26 : vector<8x128xf32>
    %28 = arith.truncf %27 : vector<8x128xf32> to vector<8x128xbf16>
    %c0_17 = arith.constant 0 : index
    %c0_18 = arith.constant 0 : index
    %29 = vector.load %arg3[%c0_17, %c0_18] : memref<128x1024xbf16, #tpu.memory_space<vmem>>, vector<128x1024xbf16>
    %cst_19 = arith.constant dense<0.000000e+00> : vector<8x1024xf32>
    %30 = tpu.matmul %28, %29, %cst_19 {dimension_numbers = #tpu.dot_dimension_numbers<[1], [0], [0], [1], [0, 0, 1, 1], [], []>} : vector<8x128xbf16>, vector<128x1024xbf16>, vector<8x1024xf32> -> vector<8x1024xf32>
    %c0_20 = arith.constant 0 : index
    %c0_21 = arith.constant 0 : index
    %31 = vector.load %arg4[%c0_20, %c0_21] : memref<1x1024xf32, #tpu.memory_space<vmem>>, vector<1x1024xf32>
    %32 = vector.broadcast %31 : vector<1x1024xf32> to vector<8x1024xf32>
    %33 = arith.addf %30, %32 : vector<8x1024xf32>
    %cst_22 = arith.constant 0.000000e+00 : f32
    %34 = vector.broadcast %cst_22 : f32 to vector<8x1024xf32>
    %35 = arith.subf %34, %33 : vector<8x1024xf32>
    %36 = math.exp %35 : vector<8x1024xf32>
    %cst_23 = arith.constant 1.000000e+00 : f32
    %37 = vector.broadcast %cst_23 : f32 to vector<8x1024xf32>
    %38 = arith.addf %37, %36 : vector<8x1024xf32>
    %39 = tpu.reciprocal %38 {approx = true} : vector<8x1024xf32> -> vector<8x1024xf32>
    %c0_24 = arith.constant 0 : index
    %c0_25 = arith.constant 0 : index
    %40 = vector.load %arg6[%c0_24, %c0_25] : memref<8x1024xf32, #tpu.memory_space<vmem>>, vector<8x1024xf32>
    tpu.vector_store %arg6[%c0_24, %c0_25], %39 {strides = array<i32>} : memref<8x1024xf32, #tpu.memory_space<vmem>>, vector<8x1024xf32>,
    %cst_26 = arith.constant 0.000000e+00 : f32
    %41 = vector.broadcast %cst_26 : f32 to vector<8x96xf32>
    %42 = tpu.concatenate %16, %20, %41 in 1 : vector<8x16xf32>, vector<8x16xf32>, vector<8x96xf32> -> vector<8x128xf32>
    %c0_27 = arith.constant 0 : index
    %c0_28 = arith.constant 0 : index
    %43 = vector.load %arg7[%c0_27, %c0_28] : memref<8x128xf32, #tpu.memory_space<vmem>>, vector<8x128xf32>
    tpu.vector_store %arg7[%c0_27, %c0_28], %42 {strides = array<i32>} : memref<8x128xf32, #tpu.memory_space<vmem>>, vector<8x128xf32>,
    %44 = tpu.iota {dimensions = array<i32: 0>} : vector<8x1xi32>
    %c8_i32 = arith.constant 8 : i32
    %45 = arith.muli %arg0, %c8_i32 : i32
    %46 = vector.broadcast %45 : i32 to vector<8x1xi32>
    %47 = arith.addi %44, %46 : vector<8x1xi32>
    %c2_i32 = arith.constant 2 : i32
    %48 = vector.broadcast %c2_i32 : i32 to vector<8x1xi32>
    %49 = arith.cmpi slt, %47, %48 : vector<8x1xi32>
    %50 = arith.extui %49 : vector<8x1xi1> to vector<8x1xi32>
    %51 = arith.sitofp %50 : vector<8x1xi32> to vector<8x1xf32>
    %cst_29 = arith.constant -1.000000e+00 : f32
    %52 = vector.broadcast %cst_29 : f32 to vector<8x16xf32>
    %53 = arith.subf %52, %20 : vector<8x16xf32>
    %54 = arith.mulf %16, %16 : vector<8x16xf32>
    %55 = arith.addf %53, %54 : vector<8x16xf32>
    %56 = math.exp %20 : vector<8x16xf32>
    %57 = arith.addf %55, %56 : vector<8x16xf32>
    %cst_30 = arith.constant 5.000000e-01 : f32
    %58 = vector.broadcast %cst_30 : f32 to vector<8x16xf32>
    %59 = arith.mulf %58, %57 : vector<8x16xf32>
    %c0_31 = arith.constant 0 : index
    %c0_32 = arith.constant 0 : index
    %60 = vector.load %arg10[%c0_31, %c0_32] : memref<1x16xf32, #tpu.memory_space<vmem>>, vector<1x16xf32>
    %61 = vector.broadcast %51 : vector<8x1xf32> to vector<8x16xf32>
    %62 = arith.mulf %59, %61 : vector<8x16xf32>
    %cst_33 = arith.constant dense<0.000000e+00> : vector<16xf32>
    %63 = vector.multi_reduction <add>, %62, %cst_33 [0] : vector<8x16xf32> to vector<16xf32>
    %64 = vector.shape_cast %63 : vector<16xf32> to vector<1x16xf32>
    %65 = arith.addf %60, %64 : vector<1x16xf32>
    %c0_34 = arith.constant 0 : index
    %c0_35 = arith.constant 0 : index
    %66 = vector.load %arg10[%c0_34, %c0_35] : memref<1x16xf32, #tpu.memory_space<vmem>>, vector<1x16xf32>
    tpu.vector_store %arg10[%c0_34, %c0_35], %65 {strides = array<i32>} : memref<1x16xf32, #tpu.memory_space<vmem>>, vector<1x16xf32>,
    %c8_i32_36 = arith.constant 8 : i32
    %67 = arith.muli %arg0, %c8_i32_36 : i32
    %68 = tpu.assume_multiple %67, 8 : i32
    %69 = arith.index_cast %68 : i32 to index
    %c0_37 = arith.constant 0 : index
    %70 = vector.load %arg9[%69, %c0_37] : memref<8x16xf32, #tpu.memory_space<vmem>>, vector<8x16xf32>
    tpu.vector_store %arg9[%69, %c0_37], %16 {strides = array<i32>} : memref<8x16xf32, #tpu.memory_space<vmem>>, vector<8x16xf32>,
    %c0_i32_38 = arith.constant 0 : i32
    %71 = arith.cmpi eq, %arg0, %c0_i32_38 : i32
    %72 = arith.extui %71 : i1 to i32
    %c0_i32_39 = arith.constant 0 : i32
    %73 = arith.cmpi ne, %72, %c0_i32_39 : i32
    scf.if %73 {
      %c0_40 = arith.constant 0 : index
      %c0_41 = arith.constant 0 : index
      %74 = vector.load %arg10[%c0_40, %c0_41] : memref<1x16xf32, #tpu.memory_space<vmem>>, vector<1x16xf32>
      %cst_42 = arith.constant 5.000000e-01 : f32
      %75 = vector.broadcast %cst_42 : f32 to vector<1x16xf32>
      %76 = arith.mulf %74, %75 : vector<1x16xf32>
      %cst_43 = arith.constant 5.000000e-02 : f32
      %77 = vector.broadcast %cst_43 : f32 to vector<1x16xf32>
      %78 = arith.cmpf olt, %76, %77 : vector<1x16xf32>
      %cst_44 = arith.constant 0.000000e+00 : f32
      %cst_45 = arith.constant 1.000000e+00 : f32
      %79 = vector.broadcast %cst_44 : f32 to vector<1x16xf32>
      %80 = vector.broadcast %cst_45 : f32 to vector<1x16xf32>
      %81 = arith.select %78, %79, %80 : vector<1x16xi1>, vector<1x16xf32>
      %82 = vector.shape_cast %81 : vector<1x16xf32> to vector<1x16xf32>
      %83 = vector.broadcast %82 : vector<1x16xf32> to vector<8x16xf32>
      %c0_46 = arith.constant 0 : index
      %c0_47 = arith.constant 0 : index
      %84 = vector.load %arg9[%c0_46, %c0_47] : memref<8x16xf32, #tpu.memory_space<vmem>>, vector<8x16xf32>
      %c272 = arith.constant 272 : index
      %c0_48 = arith.constant 0 : index
      %85 = vector.load %arg5[%c272, %c0_48] : memref<328x128xf32, #tpu.memory_space<vmem>>, vector<16x4xf32>
      %86 = arith.mulf %84, %83 : vector<8x16xf32>
      %cst_49 = arith.constant dense<0.000000e+00> : vector<8x4xf32>
      %87 = tpu.matmul %86, %85, %cst_49 {dimension_numbers = #tpu.dot_dimension_numbers<[1], [0], [0], [1], [0, 0, 1, 1], [], []>} : vector<8x16xf32>, vector<16x4xf32>, vector<8x4xf32> -> vector<8x4xf32>
      %c320 = arith.constant 320 : index
      %c0_50 = arith.constant 0 : index
      %88 = vector.load %arg5[%c320, %c0_50] : memref<328x128xf32, #tpu.memory_space<vmem>>, vector<1x4xf32>
      %89 = vector.broadcast %88 : vector<1x4xf32> to vector<8x4xf32>
      %90 = arith.addf %87, %89 : vector<8x4xf32>
      %cst_51 = arith.constant 0.000000e+00 : f32
      %91 = vector.broadcast %cst_51 : f32 to vector<8x108xf32>
      %92 = tpu.concatenate %83, %90, %91 in 1 : vector<8x16xf32>, vector<8x4xf32>, vector<8x108xf32> -> vector<8x128xf32>
      %c0_52 = arith.constant 0 : index
      %c0_53 = arith.constant 0 : index
      %93 = vector.load %arg8[%c0_52, %c0_53] : memref<8x128xf32, #tpu.memory_space<vmem>>, vector<8x128xf32>
      tpu.vector_store %arg8[%c0_52, %c0_53], %92 {strides = array<i32>} : memref<8x128xf32, #tpu.memory_space<vmem>>, vector<8x128xf32>,
    } else {
    }
    return
  }
  func.func @transform_0(%arg0: i32) -> (i32, i32) {
    %c0_i32 = arith.constant 0 : i32
    %c0_i32_0 = arith.constant 0 : i32
    return %arg0, %c0_i32 : i32, i32
  }
  func.func @transform_1(%arg0: i32) -> (i32, i32) {
    %c0_i32 = arith.constant 0 : i32
    %c0_i32_0 = arith.constant 0 : i32
    %c0_i32_1 = arith.constant 0 : i32
    return %c0_i32, %c0_i32_0 : i32, i32
  }
  func.func @transform_2(%arg0: i32) -> (i32, i32) {
    %c0_i32 = arith.constant 0 : i32
    %c0_i32_0 = arith.constant 0 : i32
    %c0_i32_1 = arith.constant 0 : i32
    return %c0_i32, %c0_i32_0 : i32, i32
  }
  func.func @transform_3(%arg0: i32) -> (i32, i32) {
    %c0_i32 = arith.constant 0 : i32
    %c0_i32_0 = arith.constant 0 : i32
    %c0_i32_1 = arith.constant 0 : i32
    return %c0_i32, %c0_i32_0 : i32, i32
  }
  func.func @transform_4(%arg0: i32) -> (i32, i32) {
    %c0_i32 = arith.constant 0 : i32
    %c0_i32_0 = arith.constant 0 : i32
    %c0_i32_1 = arith.constant 0 : i32
    return %c0_i32, %c0_i32_0 : i32, i32
  }
  func.func @transform_5(%arg0: i32) -> (i32, i32) {
    %c0_i32 = arith.constant 0 : i32
    %c0_i32_0 = arith.constant 0 : i32
    return %arg0, %c0_i32 : i32, i32
  }
  func.func @transform_6(%arg0: i32) -> (i32, i32) {
    %c0_i32 = arith.constant 0 : i32
    %c0_i32_0 = arith.constant 0 : i32
    return %arg0, %c0_i32 : i32, i32
  }
  func.func @transform_7(%arg0: i32) -> (i32, i32) {
    %c0_i32 = arith.constant 0 : i32
    %c0_i32_0 = arith.constant 0 : i32
    %c0_i32_1 = arith.constant 0 : i32
    return %c0_i32, %c0_i32_0 : i32, i32
  }
}

</mosaic_0001>

<bundles_post_ra>
// kernel: vae_forward.1
= control target key start
LH: loop header
LB: loop body
LE: loop exit
PB: predicated region body
PF: predicated region fallthrough
CT: control target
= control target key end

     0   :  { %13 = vsyncpa [#allocation5], 0  ;;  %s2641_s0 = inlined_call_operand.vmem [shape: bf16[8,1024], index: 0, kind: input, shape index: {}]   ;;  %s2642_s1 = inlined_call_operand.hbm [shape: bf16[1024,128], index: 1, kind: input, shape index: {}]   ;;  %s2643_s2 = inlined_call_operand.hbm [shape: bf16[128,1024], index: 2, kind: input, shape index: {}]   ;;  %s2644_s3 = inlined_call_operand.vmem [shape: f32[1,1024], index: 3, kind: input, shape index: {}]   ;;  %s2645_s4 = inlined_call_operand.hbm [shape: f32[328,128], index: 4, kind: input, shape index: {}]   ;;  %s2646_s5 = inlined_call_operand.vmem [shape: f32[8,1024], index: 5, kind: output, shape index: {0}]   ;;  %s2647_s6 = inlined_call_operand.vmem [shape: f32[8,128], index: 6, kind: output, shape index: {1}]   ;;  %s2648_s7 = inlined_call_operand.vmem [shape: f32[8,128], index: 7, kind: output, shape index: {2}]  }
   0x1   :  { %14 = vsyncpa [#allocation7], 0  ;;  %s2439_s24 = smov [#allocation6]   ;;  %s2369_s28 = scalar_lea.hbm %s2643_s2, 8192 }
   0x2   :  { %s34_s25 = sshll.u32 %s2439_s24, 4  ;;  %p2370_p0 = scmp.ne.s32.totalorder %s2643_s2, %s2369_s28  ;;  %s35_s25 = int_to_ptr.vmem [resolvable:$true] %s34_s25 }
   0x3   :  { %p2373_p1 = scmp.lt.u32.totalorder %s2369_s28, %s2643_s2 }
   0x5   :  { %p2375_p2 = pnand %p2373_p1, %p2370_p0 }
   0x7   :  { %2378 = shalt.err (!%p2375_p2)
}
   0x8   :  { %s2379_s10 = scalar_lea.vmem %s35_s25, 8192  ;;  %p2384_p4 = scmp.lt.s32.totalorder %s35_s25, %s35_s25 }
   0x9   :  { %p2380_p3 = scmp.ne.s32.totalorder %s35_s25, %s2379_s10  ;;  %p2385_p5 = scmp.lt.s32.totalorder %s2379_s10, %s2379_s10 }
   0xb   :  { %p2386_p6 = por %p2385_p5, %p2384_p4 }
   0xd   :  { %p2387_p7 = pnand %p2386_p6, %p2380_p3 }
   0xf   :  { %2390 = shalt.err (!%p2387_p7)
}
  0x10   :  { %s2440_s11 = smov 512   ;;  %s2441_s12 = smov 32  }
  0x11   :  { %40 = dma.hbm_to_vmem [thread:$0]  %s2643_s2, 8192, %s35_s25, [#allocation7], %s2440_s11, %s2440_s11, %s2441_s12  }
  0x12   :  { %s2442_s15 = smov [#allocation4]   ;;  %s2391_s19 = scalar_lea.hbm %s2642_s1, 8192 }
  0x13   :  { %s22_s16 = sshll.u32 %s2442_s15, 4  ;;  %p2392_p8 = scmp.ne.s32.totalorder %s2642_s1, %s2391_s19  ;;  %s23_s16 = int_to_ptr.vmem [resolvable:$true] %s22_s16 }
  0x14   :  { %p2395_p9 = scmp.lt.u32.totalorder %s2391_s19, %s2642_s1 }
  0x16   :  { %p2397_p10 = pnand %p2395_p9, %p2392_p8 }
  0x18   :  { %2400 = shalt.err (!%p2397_p10)
}
  0x19   :  { %s2401_s24 = scalar_lea.vmem %s23_s16, 8192  ;;  %p2406_p12 = scmp.lt.s32.totalorder %s23_s16, %s23_s16 }
  0x1a   :  { %p2402_p11 = scmp.ne.s32.totalorder %s23_s16, %s2401_s24  ;;  %p2407_p13 = scmp.lt.s32.totalorder %s2401_s24, %s2401_s24 }
  0x1c   :  { %p2408_p0 = por %p2407_p13, %p2406_p12 }
  0x1e   :  { %p2409_p1 = pnand %p2408_p0, %p2402_p11 }
  0x20   :  { %2412 = shalt.err (!%p2409_p1)
}
  0x21   :  { %s2443_s2 = smov 64   ;;  %s2444_s25 = smov 4  }
  0x22   :  { %28 = dma.hbm_to_vmem [thread:$0]  %s2642_s1, 8192, %s23_s16, [#allocation5], %s2443_s2, %s2443_s2, %s2444_s25  }
  0x23   :  { %s2445_s28 = smov [#allocation8]   ;;  %s2413_s9 = scalar_lea.hbm %s2645_s4, 5248 }
  0x24   :  { %s48_s29 = sshll.u32 %s2445_s28, 4  ;;  %p2414_p2 = scmp.ne.s32.totalorder %s2645_s4, %s2413_s9  ;;  %s49_s29 = int_to_ptr.vmem [resolvable:$true] %s48_s29 }
  0x25   :  { %p2417_p3 = scmp.lt.u32.totalorder %s2413_s9, %s2645_s4 }
  0x27   :  { %p2419_p4 = pnand %p2417_p3, %p2414_p2 }
  0x29   :  { %2422 = shalt.err (!%p2419_p4)
}
  0x2a   :  { %s2423_s14 = scalar_lea.vmem %s49_s29, 5248  ;;  %p2428_p6 = scmp.lt.s32.totalorder %s49_s29, %s49_s29 }
  0x2b   :  { %p2424_p5 = scmp.ne.s32.totalorder %s49_s29, %s2423_s14  ;;  %p2429_p7 = scmp.lt.s32.totalorder %s2423_s14, %s2423_s14 }
  0x2d   :  { %p2430_p8 = por %p2429_p7, %p2428_p6 }
  0x2f   :  { %p2431_p9 = pnand %p2430_p8, %p2424_p5 }
  0x31   :  { %2434 = shalt.err (!%p2431_p9)
}
  0x32   :  { %s2446_s1 = smov 128   ;;  %s2447_s15 = smov 8  }
  0x33   :  { %54 = dma.hbm_to_vmem [thread:$0]  %s2645_s4, 5248, %s49_s29, [#allocation7], %s2446_s1, %s2446_s1, %s2447_s15  }
  0x34   :  { %2435 = dma.done.wait [#allocation5], 8192  }
  0x35   :  { %2436 = vsyncadd [#allocation5], 4294959104 }
  0x36   :  { %2437 = dma.done.wait [#allocation7], 13440  }
  0x37   :  { %2438 = vsyncadd [#allocation7], 4294953856  ;;  %v2263_v0 = vld [vmem:[#allocation4 + $0x40] sm:$0xff]   ;;  %v2267_v4 = vld [vmem:[#allocation4 + $0x48] sm:$0xff]   ;;  %vm69_vm0 = vcmask 122880   ;;  %vm2450_vm1 = vmmov 0  }
  0x38   :  { %v2264_v1 = vld [vmem:[#allocation4 + $0xc0] sm:$0xff]   ;;  %1982 = vmatprep.subr.bf16.mxu0 %v2263_v0  ;;  %v2268_v5 = vld [vmem:[#allocation4 + $0xc8] sm:$0xff]   ;;  %v2271_v8 = vld [vmem:[#allocation4 + $0x50] sm:$0xff]   ;;  %vm970_vm2 = vcmask 130048   ;;  %vm1689_vm4 = vcmask 261120   ;;  %vm1821_vm6 = vcmask 162816  }
  0x39   :  { %v2265_v2 = vld [vmem:[#allocation4] sm:$0xff]   ;;  %2004 = vmatprep.subr.bf16.mxu1 %v2264_v1  ;;  %v2269_v6 = vld [vmem:[#allocation4 + $0x8] sm:$0xff]   ;;  %v2272_v9 = vld [vmem:[#allocation4 + $0xd0] sm:$0xff]  }
  0x3a   :  { %v2266_v3 = vld [vmem:[#allocation4 + $0x80] sm:$0xff]   ;;  %1983 = vmatpush3.bf16.msra.mxu0 %v2265_v2  ;;  %v2270_v7 = vld [vmem:[#allocation4 + $0x88] sm:$0xff]   ;;  %v2273_v10 = vld [vmem:[#allocation4 + $0x10] sm:$0xff]  }
  0x3b   :  { %2005 = vmatpush3.bf16.msra.mxu1 %v2266_v3  ;;  %1984 = vmatprep.subr.bf16.mxu0 %v2267_v4  ;;  %v2274_v11 = vld [vmem:[#allocation4 + $0x90] sm:$0xff]   ;;  %v2275_v12 = vld [vmem:[#allocation4 + $0x58] sm:$0xff]   ;;  %v2279_v16 = vld [vmem:[#allocation4 + $0x60] sm:$0xff]  }
  0x3c   :  { %2006 = vmatprep.subr.bf16.mxu1 %v2268_v5  ;;  %v2276_v13 = vld [vmem:[#allocation4 + $0xd8] sm:$0xff]   ;;  %v2280_v17 = vld [vmem:[#allocation4 + $0xe0] sm:$0xff]   ;;  %v2283_v20 = vld [vmem:[#allocation4 + $0x68] sm:$0xff]  }
  0x3d   :  { %v2277_v14 = vld [vmem:[#allocation4 + $0x18] sm:$0xff]   ;;  %v2281_v18 = vld [vmem:[#allocation4 + $0x20] sm:$0xff]   ;;  %v2284_v21 = vld [vmem:[#allocation4 + $0xe8] sm:$0xff]  }
  0x3e   :  { %1985 = vmatpush3.bf16.msra.mxu0 %v2269_v6  ;;  %v2278_v15 = vld [vmem:[#allocation4 + $0x98] sm:$0xff]   ;;  %v2282_v19 = vld [vmem:[#allocation4 + $0xa0] sm:$0xff]   ;;  %v2285_v22 = vld [vmem:[#allocation4 + $0x28] sm:$0xff]  }
  0x3f   :  { %2007 = vmatpush3.bf16.msra.mxu1 %v2270_v7  ;;  %1986 = vmatprep.subr.bf16.mxu0 %v2271_v8  ;;  %v2286_v23 = vld [vmem:[#allocation4 + $0xa8] sm:$0xff]   ;;  %v2287_v24 = vld [vmem:[#allocation4 + $0x70] sm:$0xff]   ;;  %v2291_v28 = vld [vmem:[#allocation4 + $0x78] sm:$0xff]  }
  0x40   :  { %2008 = vmatprep.subr.bf16.mxu1 %v2272_v9  ;;  %v2288_v25 = vld [vmem:[#allocation4 + $0xf0] sm:$0xff]   ;;  %v2292_v29 = vld [vmem:[#allocation4 + $0xf8] sm:$0xff]   ;;  %v2299_v38 = vld [vmem:[#allocation4 + $0x140] sm:$0xff]  }
  0x41   :  { %v2289_v26 = vld [vmem:[#allocation4 + $0x30] sm:$0xff]   ;;  %v2293_v30 = vld [vmem:[#allocation4 + $0x38] sm:$0xff]   ;;  %v2300_v39 = vld [vmem:[#allocation4 + $0x1c0] sm:$0xff]  }
  0x42   :  { %1987 = vmatpush3.bf16.msra.mxu0 %v2273_v10  ;;  %v2290_v27 = vld [vmem:[#allocation4 + $0xb0] sm:$0xff]   ;;  %v2294_v31 = vld [vmem:[#allocation4 + $0xb8] sm:$0xff]   ;;  %v2301_v40 = vld [vmem:[#allocation4 + $0x100] sm:$0xff]  }
  0x43   :  { %2009 = vmatpush3.bf16.msra.mxu1 %v2274_v11  ;;  %1988 = vmatprep.subr.bf16.mxu0 %v2275_v12  ;;  %v71_v32 = vld [vmem:[%s2641_s0] sm:$0xff]  ;;  %v72_v33 = vld [vmem:[%s2641_s0 + $0x8] sm:$0xff]  ;;  %v2303_v42 = vld [vmem:[#allocation4 + $0x148] sm:$0xff]  }
  0x44   :  { %2010 = vmatprep.subr.bf16.mxu1 %v2276_v13  ;;  %v1839_v34 = vcombine.low %v71_v32, %v71_v32  ;;  %v1840_v35 = vcombine.high %v71_v32, %v71_v32  ;;  %v1841_v36 = vcombine.low %v72_v33, %v72_v33  ;;  %v1842_v37 = vcombine.high %v72_v33, %v72_v33  ;;  %v2302_v41 = vld [vmem:[#allocation4 + $0x180] sm:$0xff]   ;;  %v2304_v43 = vld [vmem:[#allocation4 + $0x1c8] sm:$0xff]   ;;  %v2307_v46 = vld [vmem:[#allocation4 + $0x150] sm:$0xff]  }
  0x45   :  { %v2305_v44 = vld [vmem:[#allocation4 + $0x108] sm:$0xff]   ;;  %v2308_v47 = vld [vmem:[#allocation4 + $0x1d0] sm:$0xff]   ;;  %v2311_v50 = vld [vmem:[#allocation4 + $0x158] sm:$0xff]  }
  0x46   :  { %1989 = vmatpush3.bf16.msra.mxu0 %v2277_v14  ;;  %652 = vmatprep.mubr.bf16.mxu0 %v1840_v35  ;;  %v2306_v45 = vld [vmem:[#allocation4 + $0x188] sm:$0xff]   ;;  %v2309_v48 = vld [vmem:[#allocation4 + $0x110] sm:$0xff]   ;;  %v2312_v51 = vld [vmem:[#allocation4 + $0x1d8] sm:$0xff]  }
  0x47   :  { %2011 = vmatpush3.bf16.msra.mxu1 %v2278_v15  ;;  %1990 = vmatprep.subr.bf16.mxu0 %v2279_v16  ;;  %v2310_v49 = vld [vmem:[#allocation4 + $0x190] sm:$0xff]   ;;  %v2313_v52 = vld [vmem:[#allocation4 + $0x118] sm:$0xff]   ;;  %v2315_v54 = vld [vmem:[#allocation4 + $0x160] sm:$0xff]   ;;  %v2448_v15 = vmov 0.0|0.0  }
  0x48   :  { %2012 = vmatprep.subr.bf16.mxu1 %v2280_v17  ;;  %692 = vmatprep.mubr.bf16.mxu1 %v1842_v37  ;;  %v2314_v53 = vld [vmem:[#allocation4 + $0x198] sm:$0xff]   ;;  %v2316_v55 = vld [vmem:[#allocation4 + $0x1e0] sm:$0xff]   ;;  %v2319_v58 = vld [vmem:[#allocation4 + $0x168] sm:$0xff]  }
  0x49   :  { %v2317_v56 = vld [vmem:[#allocation4 + $0x120] sm:$0xff]   ;;  %v2320_v59 = vld [vmem:[#allocation4 + $0x1e8] sm:$0xff]   ;;  %v2323_v62 = vld [vmem:[#allocation4 + $0x170] sm:$0xff]  }
  0x4a   :  { %1991 = vmatpush3.bf16.msra.mxu0 %v2281_v18  ;;  %v2318_v57 = vld [vmem:[#allocation4 + $0x1a0] sm:$0xff]   ;;  %v2321_v60 = vld [vmem:[#allocation4 + $0x128] sm:$0xff]   ;;  %v2324_v63 = vld [vmem:[#allocation4 + $0x1f0] sm:$0xff]  }
  0x4b   :  { %2013 = vmatpush3.bf16.msra.mxu1 %v2282_v19  ;;  %1992 = vmatprep.subr.bf16.mxu0 %v2283_v20  ;;  %v2322_v61 = vld [vmem:[#allocation4 + $0x1a8] sm:$0xff]   ;;  %v2325_v0 = vld [vmem:[#allocation4 + $0x130] sm:$0xff]   ;;  %v2327_v2 = vld [vmem:[#allocation4 + $0x178] sm:$0xff]  }
  0x4c   :  { %2014 = vmatprep.subr.bf16.mxu1 %v2284_v21  ;;  %v2326_v1 = vld [vmem:[#allocation4 + $0x1b0] sm:$0xff]   ;;  %v2328_v3 = vld [vmem:[#allocation4 + $0x1f8] sm:$0xff]   ;;  %v73_v6 = vld [vmem:[%s2641_s0 + $0x10] sm:$0xff] }
  0x4d   :  { %v2329_v4 = vld [vmem:[#allocation4 + $0x138] sm:$0xff]   ;;  %v1843_v7 = vcombine.low %v73_v6, %v73_v6  ;;  %v1844_v8 = vcombine.high %v73_v6, %v73_v6  ;;  %v74_v9 = vld [vmem:[%s2641_s0 + $0x18] sm:$0xff]  ;;  %v783_v18 = vld [vmem:[#allocation8 + $0x20] sm:$0xff]  ;;  %s2451_s0 = smov 16  }
  0x4e   :  { %1993 = vmatpush3.bf16.msra.mxu0 %v2285_v22  ;;  %v2330_v5 = vld [vmem:[#allocation4 + $0x1b8] sm:$0xff]   ;;  %v1845_v10 = vcombine.low %v74_v9, %v74_v9  ;;  %v1846_v11 = vcombine.high %v74_v9, %v74_v9  ;;  %v781_v12 = vld [vmem:[#allocation8 + $0x10] sm:$0xff]  ;;  %v784_v19 = vld [vmem:[#allocation8 + $0x28] sm:$0xff] }
  0x4f   :  { %2015 = vmatpush3.bf16.msra.mxu1 %v2286_v23  ;;  %1994 = vmatprep.subr.bf16.mxu0 %v2287_v24  ;;  %v782_v13 = vld [vmem:[#allocation8 + $0x18] sm:$0xff]  ;;  %v797_v14 = vld [vmem:[#allocation8 + $0x90] sm:$0xff]  ;;  %v799_v21 = vld [vmem:[#allocation8 + $0xa0] sm:$0xff]  ;;  %v2198_v23 = vpack.c.bf16 %v784_v19, %v783_v18 }
  0x50   :  { %2016 = vmatprep.subr.bf16.mxu1 %v2288_v25  ;;  %v2195_v16 = vpack.c.bf16 %v782_v13, %v781_v12  ;;  %v798_v17 = vld [vmem:[#allocation8 + $0x98] sm:$0xff]  ;;  %v800_v22 = vld [vmem:[#allocation8 + $0xa8] sm:$0xff]  ;;  %v785_v25 = vld [vmem:[#allocation8 + $0x30] sm:$0xff] }
  0x51   :  { %v2219_v20 = vpack.c.bf16 %v798_v17, %v797_v14  ;;  %v2222_v24 = vpack.c.bf16 %v800_v22, %v799_v21  ;;  %v788_v32 = vld [vmem:[#allocation8 + $0x48] sm:$0xff]  ;;  %v803_v33 = vld [vmem:[#allocation8 + $0xc0] sm:$0xff]  ;;  %v789_v37 = vld [vmem:[#allocation8 + $0x50] sm:$0xff] }
  0x52   :  { %1995 = vmatpush3.bf16.msra.mxu0 %v2289_v26  ;;  %v786_v26 = vld [vmem:[#allocation8 + $0x38] sm:$0xff] }
  0x53   :  { %2017 = vmatpush3.bf16.msra.mxu1 %v2290_v27  ;;  %1996 = vmatprep.subr.bf16.mxu0 %v2291_v28  ;;  %v801_v27 = vld [vmem:[#allocation8 + $0xb0] sm:$0xff]  ;;  %v802_v28 = vld [vmem:[#allocation8 + $0xb8] sm:$0xff] }
  0x54   :  { %2018 = vmatprep.subr.bf16.mxu1 %v2292_v29  ;;  %v2201_v29 = vpack.c.bf16 %v786_v26, %v785_v25  ;;  %v963_v25 = vld [vmem:[#allocation8] sm:$0xff]  ;;  %v964_v26 = vld [vmem:[#allocation8 + $0x8] sm:$0xff] }
  0x56   :  { %1997 = vmatpush3.bf16.msra.mxu0 %v2293_v30  ;;  %v2225_v30 = vpack.c.bf16 %v802_v28, %v801_v27  ;;  %v2243_v27 = vpack.c.bf16 %v964_v26, %v963_v25  ;;  %v1046_v28 = vld [vmem:[#allocation6] sm:$0xff]  ;;  %v1087_v26 = vld [vmem:[#allocation6 + $0x148] sm:$0xff] }
  0x57   :  { %2019 = vmatpush3.bf16.msra.mxu1 %v2294_v31  ;;  %2026 = vmatprep.subr.bf16.mxu0 %v2299_v38  ;;  %v787_v31 = vld [vmem:[#allocation8 + $0x40] sm:$0xff]  ;;  %v790_v38 = vld [vmem:[#allocation8 + $0x58] sm:$0xff] }
  0x58   :  { %2048 = vmatprep.subr.bf16.mxu1 %v2300_v39  ;;  %v2204_v35 = vpack.c.bf16 %v788_v32, %v787_v31  ;;  %v805_v39 = vld [vmem:[#allocation8 + $0xd0] sm:$0xff] }
  0x59   :  { %653 = vmatmul.mubr.bf16.vlgmr.msra.gmra.mrb[0].mxu0 %v1839_v34  ;;  %v804_v34 = vld [vmem:[#allocation8 + $0xc8] sm:$0xff] }
  0x5a   :  { %693 = vmatmul.mubr.bf16.vlgmr.msra.gmra.mrb[0].mxu1 %v1841_v36  ;;  %2027 = vmatpush3.bf16.msra.mxu0 %v2301_v40  ;;  %v2228_v36 = vpack.c.bf16 %v804_v34, %v803_v33  ;;  %v806_v40 = vld [vmem:[#allocation8 + $0xd8] sm:$0xff]  ;;  %v1051_v33 = vld [vmem:[#allocation6 + $0x28] sm:$0xff]  ;;  %v1054_v34 = vld [vmem:[#allocation6 + $0x40] sm:$0xff] }
  0x5b   :  { %2049 = vmatpush3.bf16.msra.mxu1 %v2302_v41  ;;  %2028 = vmatprep.subr.bf16.mxu0 %v2303_v42  ;;  %v2207_v41 = vpack.c.bf16 %v790_v38, %v789_v37  ;;  %v2231_v42 = vpack.c.bf16 %v806_v40, %v805_v39  ;;  %v1062_v38 = vld [vmem:[#allocation6 + $0x80] sm:$0xff] }
  0x5c   :  { %2050 = vmatprep.subr.bf16.mxu1 %v2304_v43  ;;  %732 = vmatprep.mubr.bf16.mxu0 %v1844_v8  ;;  %v791_v43 = vld [vmem:[#allocation8 + $0x60] sm:$0xff] }
  0x5d   :  { %772 = vmatprep.mubr.bf16.mxu1 %v1846_v11  ;;  %v1066_v39 = vld [vmem:[#allocation6 + $0xa0] sm:$0xff] }
  0x5e   :  { %2029 = vmatpush3.bf16.msra.mxu0 %v2305_v44  ;;  %v792_v44 = vld [vmem:[#allocation8 + $0x68] sm:$0xff] }
  0x5f   :  { %2051 = vmatpush3.bf16.msra.mxu1 %v2306_v45  ;;  %2030 = vmatprep.subr.bf16.mxu0 %v2307_v46  ;;  %v807_v45 = vld [vmem:[#allocation8 + $0xe0] sm:$0xff]  ;;  %v808_v46 = vld [vmem:[#allocation8 + $0xe8] sm:$0xff] }
  0x60   :  { %2052 = vmatprep.subr.bf16.mxu1 %v2308_v47  ;;  %v2210_v47 = vpack.c.bf16 %v792_v44, %v791_v43  ;;  %v1055_v43 = vld [vmem:[#allocation6 + $0x48] sm:$0xff]  ;;  %v1932_v44 = vcombine.high %v1062_v38, %v1066_v39 }
  0x62   :  { %2031 = vmatpush3.bf16.msra.mxu0 %v2309_v48  ;;  %v2234_v48 = vpack.c.bf16 %v808_v46, %v807_v45  ;;  %v1059_v45 = vld [vmem:[#allocation6 + $0x68] sm:$0xff]  ;;  %v1070_v46 = vld [vmem:[#allocation6 + $0xc0] sm:$0xff] }
  0x63   :  { %2053 = vmatpush3.bf16.msra.mxu1 %v2310_v49  ;;  %2032 = vmatprep.subr.bf16.mxu0 %v2311_v50  ;;  %v793_v49 = vld [vmem:[#allocation8 + $0x70] sm:$0xff]  ;;  %v794_v50 = vld [vmem:[#allocation8 + $0x78] sm:$0xff] }
  0x64   :  { %2054 = vmatprep.subr.bf16.mxu1 %v2312_v51  ;;  %v809_v51 = vld [vmem:[#allocation8 + $0xf0] sm:$0xff] }
  0x66   :  { %2033 = vmatpush3.bf16.msra.mxu0 %v2313_v52  ;;  %v2213_v52 = vpack.c.bf16 %v794_v50, %v793_v49 }
  0x67   :  { %2055 = vmatpush3.bf16.msra.mxu1 %v2314_v53  ;;  %2034 = vmatprep.subr.bf16.mxu0 %v2315_v54  ;;  %v810_v53 = vld [vmem:[#allocation8 + $0xf8] sm:$0xff] }
  0x68   :  { %2056 = vmatprep.subr.bf16.mxu1 %v2316_v55  ;;  %v2237_v54 = vpack.c.bf16 %v810_v53, %v809_v51  ;;  %v795_v55 = vld [vmem:[#allocation8 + $0x80] sm:$0xff]  ;;  %v1931_v51 = vcombine.low %v1062_v38, %v1066_v39 }
  0x6a   :  { %2035 = vmatpush3.bf16.msra.mxu0 %v2317_v56  ;;  %v796_v56 = vld [vmem:[#allocation8 + $0x88] sm:$0xff] }
  0x6b   :  { %2057 = vmatpush3.bf16.msra.mxu1 %v2318_v57  ;;  %2036 = vmatprep.subr.bf16.mxu0 %v2319_v58  ;;  %v811_v57 = vld [vmem:[#allocation8 + $0x100] sm:$0xff]  ;;  %v2216_v58 = vpack.c.bf16 %v796_v56, %v795_v55  ;;  %v1926_v56 = vcombine.high %v1055_v43, %v1059_v45 }
  0x6c   :  { %2058 = vmatprep.subr.bf16.mxu1 %v2320_v59  ;;  %v812_v59 = vld [vmem:[#allocation8 + $0x108] sm:$0xff] }
  0x6e   :  { %2037 = vmatpush3.bf16.msra.mxu0 %v2321_v60  ;;  %v2240_v60 = vpack.c.bf16 %v812_v59, %v811_v57  ;;  %v1063_v57 = vld [vmem:[#allocation6 + $0x88] sm:$0xff] }
  0x6f   :  { %2059 = vmatpush3.bf16.msra.mxu1 %v2322_v61  ;;  %2038 = vmatprep.subr.bf16.mxu0 %v2323_v62  ;;  %v2449_v61 = vmov 0.0   ;;  %v1067_v59 = vld [vmem:[#allocation6 + $0xa8] sm:$0xff] }
  0x70   :  { %2060 = vmatprep.subr.bf16.mxu1 %v2324_v63  ;;  %70 = vst.msk [vmem:[#allocation3] sm:$0x1] %vm69_vm0, %v2449_v61 }
  0x72   :  { %2039 = vmatpush3.bf16.msra.mxu0 %v2325_v0  ;;  %v1838_v0 = vld [vmem:[#allocation8 + $0x120] ss:$0 sm:$0xff] }
  0x73   :  { %2061 = vmatpush3.bf16.msra.mxu1 %v2326_v1  ;;  %2040 = vmatprep.subr.bf16.mxu0 %v2327_v2 }
  0x74   :  { %2062 = vmatprep.subr.bf16.mxu1 %v2328_v3 }
  0x76   :  { %2041 = vmatpush3.bf16.msra.mxu0 %v2329_v4 }
  0x77   :  { %2063 = vmatpush3.bf16.msra.mxu1 %v2330_v5  ;;  %2194 = vmatprep.subr.bf16.mxu0 %v2448_v15 }
  0x78   :  { %2218 = vmatprep.subr.bf16.mxu1 %v2448_v15 }
  0x79   :  { %733 = vmatmul.mubr.bf16.vlgmr.msra.gmra.mrb[4].mxu0 %v1843_v7 }
  0x7a   :  { %773 = vmatmul.mubr.bf16.vlgmr.msra.gmra.mrb[4].mxu1 %v1845_v10  ;;  %2196 = vmatpush3.bf16.msra.mxu0 %v2195_v16 }
  0x7b   :  { %2220 = vmatpush3.bf16.msra.mxu1 %v2219_v20  ;;  %2197 = vmatprep.subr.bf16.mxu0 %v2448_v15 }
  0x7c   :  { %2221 = vmatprep.subr.bf16.mxu1 %v2448_v15  ;;  %2142 = vmatprep.mubr.msk.f32.mxu0 %vm2450_vm1, %v2449_v61 }
  0x7d   :  { %2177 = vmatprep.mubr.msk.f32.mxu1 %vm2450_vm1, %v2449_v61 }
  0x7e   :  { %2199 = vmatpush3.bf16.msra.mxu0 %v2198_v23 }
  0x7f   :  { %2223 = vmatpush3.bf16.msra.mxu1 %v2222_v24  ;;  %2200 = vmatprep.subr.bf16.mxu0 %v2448_v15 }
  0x80   :  { %2224 = vmatprep.subr.bf16.mxu1 %v2448_v15 }
  0x82   :  { %2202 = vmatpush3.bf16.msra.mxu0 %v2201_v29  ;;  %v1050_v29 = vld [vmem:[#allocation6 + $0x20] sm:$0xff] }
  0x83   :  { %2226 = vmatpush3.bf16.msra.mxu1 %v2225_v30  ;;  %2203 = vmatprep.subr.bf16.mxu0 %v2448_v15  ;;  %v1047_v30 = vld [vmem:[#allocation6 + $0x8] sm:$0xff]  ;;  %v1915_v31 = vcombine.low %v1046_v28, %v1050_v29  ;;  %v1916_v32 = vcombine.high %v1046_v28, %v1050_v29 }
  0x84   :  { %2227 = vmatprep.subr.bf16.mxu1 %v2448_v15  ;;  %v1917_v50 = vcombine.low %v1047_v30, %v1051_v33 }
  0x86   :  { %2205 = vmatpush3.bf16.msra.mxu0 %v2204_v35  ;;  %v1058_v35 = vld [vmem:[#allocation6 + $0x60] sm:$0xff] }
  0x87   :  { %2229 = vmatpush3.bf16.msra.mxu1 %v2228_v36  ;;  %2206 = vmatprep.subr.bf16.mxu0 %v2448_v15  ;;  %v1918_v36 = vcombine.high %v1047_v30, %v1051_v33  ;;  %v1924_v37 = vcombine.high %v1054_v34, %v1058_v35  ;;  %v1923_v40 = vcombine.low %v1054_v34, %v1058_v35  ;;  %v1095_v35 = vld [vmem:[#allocation6 + $0x188] sm:$0xff] }
  0x88   :  { %2230 = vmatprep.subr.bf16.mxu1 %v2448_v15 }
  0x8a   :  { %2208 = vmatpush3.bf16.msra.mxu0 %v2207_v41  ;;  %v1911_v41 = vld [vmem:[#allocation8 + $0x130] ss:$0 sm:$0xff] }
  0x8b   :  { %2232 = vmatpush3.bf16.msra.mxu1 %v2231_v42  ;;  %2209 = vmatprep.subr.bf16.mxu0 %v2448_v15  ;;  %v1912_v42 = vld [vmem:[#allocation8 + $0x138] ss:$0 sm:$0xff] }
  0x8c   :  { %2233 = vmatprep.subr.bf16.mxu1 %v2448_v15 }
  0x8e   :  { %2211 = vmatpush3.bf16.msra.mxu0 %v2210_v47  ;;  %v1074_v47 = vld [vmem:[#allocation6 + $0xe0] sm:$0xff] }
  0x8f   :  { %2235 = vmatpush3.bf16.msra.mxu1 %v2234_v48  ;;  %2212 = vmatprep.subr.bf16.mxu0 %v2448_v15 }
  0x90   :  { %2236 = vmatprep.subr.bf16.mxu1 %v2448_v15 }
  0x92   :  { %2214 = vmatpush3.bf16.msra.mxu0 %v2213_v52 }
  0x93   :  { %2238 = vmatpush3.bf16.msra.mxu1 %v2237_v54  ;;  %2215 = vmatprep.subr.bf16.mxu0 %v2448_v15 }
  0x94   :  { %2239 = vmatprep.subr.bf16.mxu1 %v2448_v15 }
  0x96   :  { %2217 = vmatpush3.bf16.msra.mxu0 %v2216_v58  ;;  %v1940_v58 = vcombine.high %v1070_v46, %v1074_v47 }
  0x97   :  { %2241 = vmatpush3.bf16.msra.mxu1 %v2240_v60  ;;  %2242 = vmatprep.subr.bf16.mxu0 %v2448_v15  ;;  %v1078_v60 = vld [vmem:[#allocation6 + $0x100] sm:$0xff] }
  0x98   :  { %1472 = vmatprep.subr.bf16.mxu1 %v1916_v32 }
 0x12c   :  { %v1998_v62 = vpop.f32.mrb[0].mxu0 }
 0x12d   :  { %v2020_v63 = vpop.f32.mrb[0].mxu1  ;;  %v1999_v1 = vpop.f32.mrb[1].mxu0 }
 0x12e   :  { %v2021_v2 = vpop.f32.mrb[1].mxu1  ;;  %v2000_v3 = vadd.f32 %v1999_v1, %v1998_v62  ;;  %v2001_v5 = vpop.f32.mrb[2].mxu0  ;;  %v1082_v62 = vld [vmem:[#allocation6 + $0x120] sm:$0xff]  ;;  %v1939_v1 = vcombine.low %v1070_v46, %v1074_v47  ;;  %v1707_v47 = vld [vmem:[#allocation3] sm:$0x1] }
 0x12f   :  { %v2022_v4 = vadd.f32 %v2021_v2, %v2020_v63  ;;  %v2023_v6 = vpop.f32.mrb[2].mxu1  ;;  %v2002_v7 = vpop.f32.mrb[3].mxu0  ;;  %v1934_v2 = vcombine.high %v1063_v57, %v1067_v59  ;;  %v1112_v5 = vlaneseq }
 0x130   :  { %v2024_v8 = vpop.f32.mrb[3].mxu1  ;;  %v655_v9 = vadd.f32 %v2000_v3, %v1838_v0  ;;  %v1925_v0 = vcombine.low %v1055_v43, %v1059_v45  ;;  %v1071_v3 = vld [vmem:[#allocation6 + $0xc8] sm:$0xff]  ;;  %v1086_v7 = vld [vmem:[#allocation6 + $0x140] sm:$0xff] }
 0x131   :  { %v1075_v6 = vld [vmem:[#allocation6 + $0xe8] sm:$0xff]  ;;  %v1090_v8 = vld [vmem:[#allocation6 + $0x160] sm:$0xff] }
 0x132   :  { %v695_v10 = vadd.f32 %v2022_v4, %v655_v9  ;;  %v1948_v4 = vcombine.high %v1078_v60, %v1082_v62  ;;  %v1933_v9 = vcombine.low %v1063_v57, %v1067_v59  ;;  %v1048_v59 = vld [vmem:[#allocation6 + $0x10] sm:$0xff] }
 0x14c   :  { %v2042_v11 = vpop.f32.mrb[4].mxu0 }
 0x14d   :  { %v2064_v12 = vpop.f32.mrb[4].mxu1  ;;  %v2043_v13 = vpop.f32.mrb[5].mxu0 }
 0x14e   :  { %v2065_v14 = vpop.f32.mrb[5].mxu1  ;;  %v2044_v16 = vadd.f32 %v2043_v13, %v2042_v11  ;;  %v2045_v18 = vpop.f32.mrb[6].mxu0  ;;  %v1942_v11 = vcombine.high %v1071_v3, %v1075_v6  ;;  %v1956_v13 = vcombine.high %v1086_v7, %v1090_v8 }
 0x14f   :  { %v2066_v17 = vadd.f32 %v2065_v14, %v2064_v12  ;;  %v2067_v19 = vpop.f32.mrb[6].mxu1  ;;  %v2046_v20 = vpop.f32.mrb[7].mxu0  ;;  %v1079_v12 = vld [vmem:[#allocation6 + $0x108] sm:$0xff] }
 0x150   :  { %v2068_v21 = vpop.f32.mrb[7].mxu1  ;;  %v735_v22 = vadd.f32 %v2044_v16, %v695_v10  ;;  %v1947_v10 = vcombine.low %v1078_v60, %v1082_v62  ;;  %v2576_v16 = vshrl.u32 %v1112_v5, 7  ;;  %v1083_v18 = vld [vmem:[#allocation6 + $0x128] sm:$0xff]  ;;  %v1094_v19 = vld [vmem:[#allocation6 + $0x180] sm:$0xff]  ;;  %v1052_v60 = vld [vmem:[#allocation6 + $0x30] sm:$0xff] }
 0x151   :  { %v1098_v20 = vld [vmem:[#allocation6 + $0x1a0] sm:$0xff]  ;;  %v1941_v21 = vcombine.low %v1071_v3, %v1075_v6  ;;  %v1949_v30 = vcombine.low %v1079_v12, %v1083_v18  ;;  %v1049_v62 = vld [vmem:[#allocation6 + $0x18] sm:$0xff] }
 0x152   :  { %v775_v23 = vadd.f32 %v2066_v17, %v735_v22  ;;  %v1955_v22 = vcombine.low %v1086_v7, %v1090_v8  ;;  %vm1697_vm3 = vcmp.lt.s32.totalorder %v2576_v16, 2  ;;  %v1913_v8 = vld [vmem:[#allocation8 + $0x128] ss:$0 sm:$0xff] }
 0x153   :  { %v1979_v32 = vsel %vm1697_vm3, 1.0, %v2449_v61 }
 0x154   :  { %v780_v24 = vmax.f32 %v775_v23, 0.0  ;;  %v1950_v23 = vcombine.high %v1079_v12, %v1083_v18  ;;  %v1056_v12 = vld [vmem:[#allocation6 + $0x50] sm:$0xff] }
 0x156   :  { %2143 = vmatmul.mubr.f32.vlgmr.msra.gmra.mrb[8].mxu0 %v780_v24  ;;  %2178 = vmatmul.mubr.f32.vlgmr.msra.gmra.mrb[8].mxu1 %v780_v24  ;;  %v1964_v24 = vcombine.high %v1094_v19, %v1098_v20 }
 0x157   :  { %2184 = vmatprep.mubr.msk.f32.mxu0 %vm2450_vm1, %v2449_v61  ;;  %2244 = vmatpush3.bf16.msra.mxu0 %v2243_v27  ;;  %v1091_v27 = vld [vmem:[#allocation6 + $0x168] sm:$0xff] }
 0x158   :  { %1513 = vmatprep.subr.bf16.mxu0 %v1918_v36  ;;  %1473 = vmatpush1.bf16.msra.mxu1 %v1915_v31  ;;  %v1963_v31 = vcombine.low %v1094_v19, %v1098_v20  ;;  %v1958_v33 = vcombine.high %v1087_v26, %v1091_v27  ;;  %v1099_v36 = vld [vmem:[#allocation6 + $0x1a8] sm:$0xff]  ;;  %v1957_v38 = vcombine.low %v1087_v26, %v1091_v27 }
 0x159   :  { %1474 = vmatprep.subr.bf16.mxu1 %v1924_v37  ;;  %v1966_v39 = vcombine.high %v1095_v35, %v1099_v36 }
 0x15c   :  { %1475 = vmatpush1.bf16.msra.mxu1 %v1923_v40 }
 0x15d   :  { %1476 = vmatprep.subr.bf16.mxu1 %v1932_v44 }
 0x160   :  { %1477 = vmatpush1.bf16.msra.mxu1 %v1931_v51  ;;  %v1106_v51 = vld [vmem:[#allocation6 + $0x1e0] sm:$0xff] }
 0x161   :  { %1478 = vmatprep.subr.bf16.mxu1 %v1940_v58 }
 0x164   :  { %1479 = vmatpush1.bf16.msra.mxu1 %v1939_v1  ;;  %v1919_v1 = vcombine.low %v1048_v59, %v1052_v60 }
 0x165   :  { %1480 = vmatprep.subr.bf16.mxu1 %v1948_v4  ;;  %v2452_v4 = vmov 0  }
 0x166   :  { %1504 = vmatprep.mubr.bf16.mxu1 %v2452_v4 }
 0x168   :  { %1481 = vmatpush1.bf16.msra.mxu1 %v1947_v10 }
 0x169   :  { %1482 = vmatprep.subr.bf16.mxu1 %v1956_v13  ;;  %v1060_v13 = vld [vmem:[#allocation6 + $0x70] sm:$0xff] }
 0x16a   :  { %v1928_v20 = vcombine.high %v1056_v12, %v1060_v13 }
 0x16c   :  { %1483 = vmatpush1.bf16.msra.mxu1 %v1955_v22  ;;  %v1064_v22 = vld [vmem:[#allocation6 + $0x90] sm:$0xff] }
 0x16d   :  { %1484 = vmatprep.subr.bf16.mxu1 %v1964_v24  ;;  %v1069_v24 = vld [vmem:[#allocation6 + $0xb8] sm:$0xff] }
 0x170   :  { %1485 = vmatpush1.bf16.msra.mxu1 %v1963_v31  ;;  %v1073_v31 = vld [vmem:[#allocation6 + $0xd8] sm:$0xff] }
 0x229   :  { %v884_v48 = vpop.f32.mrb[8].mxu0  ;;  %v959_v49 = vpop.f32.mrb[8].mxu1 }
 0x22a   :  { %v2567_v52 = vadd.f32 %v1911_v41, %v884_v48  ;;  %v960_v53 = vadd.f32 %v1912_v42, %v959_v49  ;;  %v2144_v54 = vpop.f32.mrb[9].mxu0  ;;  %v2179_v55 = vpop.f32.mrb[9].mxu1  ;;  %v1965_v42 = vcombine.low %v1095_v35, %v1099_v36 }
 0x22b   :  { %v1107_v55 = vld [vmem:[#allocation6 + $0x1e8] sm:$0xff] }
 0x22c   :  { %1720 = vst.msk [vmem:[#allocation2] sm:$0xff] %vm970_vm2, %v2567_v52  ;;  %v1703_v63 = vmul.f32 1.442695, %v960_v53  ;;  %1685 = vrot.lane.b32.xlu0 %v960_v53, %s2451_s0  ;;  %2185 = vmatmul.mubr.msk.f32.vlgmr.msra.gmra.mrb[10].mxu0 %vm970_vm2, %v2567_v52  ;;  %v1701_v14 = vmul.f32 %v2567_v52, %v2567_v52  ;;  %v1700_v17 = vsub.f32 -1.0, %v960_v53  ;;  %v1103_v53 = vld [vmem:[#allocation6 + $0x1c8] sm:$0xff] }
 0x22d   :  { %1514 = vmatpush1.bf16.msra.mxu0 %v1917_v50  ;;  %v1102_v50 = vld [vmem:[#allocation6 + $0x1c0] sm:$0xff]  ;;  %v1973_v57 = vcombine.low %v1103_v53, %v1107_v55  ;;  %v1974_v58 = vcombine.high %v1103_v53, %v1107_v55  ;;  %1545 = vmatprep.mubr.bf16.mxu0 %v2452_v4  ;;  %v1100_v55 = vld [vmem:[#allocation6 + $0x1b0] sm:$0xff] }
 0x22e   :  { %2335 = vpow2.f32 %v1703_v63  ;;  %1515 = vmatprep.subr.bf16.mxu0 %v1926_v56  ;;  %v1702_v25 = vadd.f32 %v1701_v14, %v1700_v17  ;;  %v1972_v54 = vcombine.high %v1102_v50, %v1106_v51  ;;  %v1971_v56 = vcombine.low %v1102_v50, %v1106_v51  ;;  %v1057_v14 = vld [vmem:[#allocation6 + $0x58] sm:$0xff] }
 0x22f   :  { %v1920_v63 = vcombine.high %v1048_v59, %v1052_v60  ;;  %v1061_v17 = vld [vmem:[#allocation6 + $0x78] sm:$0xff] }
 0x230   :  { %1486 = vmatprep.subr.bf16.mxu1 %v1972_v54  ;;  %v1929_v26 = vcombine.low %v1057_v14, %v1061_v17  ;;  %v1096_v54 = vld [vmem:[#allocation6 + $0x190] sm:$0xff] }
 0x231   :  { %1516 = vmatpush1.bf16.msra.mxu0 %v1925_v0  ;;  %1487 = vmatpush1.bf16.msra.mxu1 %v1971_v56  ;;  %v1053_v0 = vld [vmem:[#allocation6 + $0x38] sm:$0xff]  ;;  %v1968_v60 = vcombine.high %v1096_v54, %v1100_v55 }
 0x232   :  { %1517 = vmatprep.subr.bf16.mxu0 %v1934_v2  ;;  %v1921_v2 = vcombine.low %v1049_v62, %v1053_v0  ;;  %v1922_v3 = vcombine.high %v1049_v62, %v1053_v0  ;;  %1554 = vmatprep.subr.bf16.mxu1 %v1920_v63  ;;  %v1097_v56 = vld [vmem:[#allocation6 + $0x198] sm:$0xff]  ;;  %v1104_v63 = vld [vmem:[#allocation6 + $0x1d0] sm:$0xff] }
 0x233   :  { %v1108_v0 = vld [vmem:[#allocation6 + $0x1f0] sm:$0xff] }
 0x235   :  { %1518 = vmatpush1.bf16.msra.mxu0 %v1933_v9 }
 0x236   :  { %1519 = vmatprep.subr.bf16.mxu0 %v1942_v11 }
 0x238   :  { %v2336_v28 = vpop.eup %2335 }
 0x239   :  { %v1705_v29 = vadd.f32 %v2336_v28, %v1702_v25  ;;  %1520 = vmatpush1.bf16.msra.mxu0 %v1941_v21  ;;  %v1930_v21 = vcombine.high %v1057_v14, %v1061_v17  ;;  %v1927_v25 = vcombine.low %v1056_v12, %v1060_v13  ;;  %v1736_v12 = vld [vmem:[#allocation8 + $0x118] sm:$0xff]  ;;  %v1114_v14 = vsub.s32 0, %v2576_v16 }
 0x23a   :  { %1521 = vmatprep.subr.bf16.mxu0 %v1950_v23  ;;  %v1065_v23 = vld [vmem:[#allocation6 + $0x98] sm:$0xff]  ;;  %v2453_v17 = vmov 1.0  }
 0x23b   :  { %v1706_v34 = vmul.f32 0.5, %v1705_v29  ;;  %v1938_v28 = vcombine.high %v1065_v23, %v1069_v24  ;;  %v1072_v29 = vld [vmem:[#allocation6 + $0xd0] sm:$0xff] }
 0x23d   :  { %v1708_v37 = vmul.f32 %v1979_v32, %v1706_v34  ;;  %1522 = vmatpush1.bf16.msra.mxu0 %v1949_v30  ;;  %v1076_v30 = vld [vmem:[#allocation6 + $0xf0] sm:$0xff]  ;;  %v1077_v32 = vld [vmem:[#allocation6 + $0xf8] sm:$0xff]  ;;  %v1937_v34 = vcombine.low %v1065_v23, %v1069_v24  ;;  %v1118_v23 = vsub.s32 1, %v2576_v16 }
 0x23e   :  { %1523 = vmatprep.subr.bf16.mxu0 %v1958_v33  ;;  %v1944_v35 = vcombine.high %v1072_v29, %v1076_v30  ;;  %v1946_v36 = vcombine.high %v1073_v31, %v1077_v32 }
 0x23f   :  { %v1709_v40 = vsel %vm970_vm2, %v1708_v37, 0.0  ;;  %v1080_v37 = vld [vmem:[#allocation6 + $0x110] sm:$0xff] }
 0x240   :  { %v1710_v41 = vrot.slane %v1709_v40, 4 }
 0x241   :  { %1524 = vmatpush1.bf16.msra.mxu0 %v1957_v38  ;;  %v1084_v38 = vld [vmem:[#allocation6 + $0x130] sm:$0xff] }
 0x242   :  { %v1711_v43 = vadd.f32 %v1710_v41, %v1709_v40  ;;  %1525 = vmatprep.subr.bf16.mxu0 %v1966_v39  ;;  %v1081_v39 = vld [vmem:[#allocation6 + $0x118] sm:$0xff]  ;;  %v1943_v41 = vcombine.low %v1072_v29, %v1076_v30 }
 0x243   :  { %v1085_v40 = vld [vmem:[#allocation6 + $0x138] sm:$0xff] }
 0x244   :  { %v1712_v44 = vrot.slane %v1711_v43, 2  ;;  %v1953_v50 = vcombine.low %v1081_v39, %v1085_v40 }
 0x245   :  { %1526 = vmatpush1.bf16.msra.mxu0 %v1965_v42  ;;  %v1945_v42 = vcombine.low %v1073_v31, %v1077_v32 }
 0x246   :  { %v1713_v45 = vadd.f32 %v1712_v44, %v1711_v43  ;;  %1527 = vmatprep.subr.bf16.mxu0 %v1974_v58  ;;  %v1952_v43 = vcombine.high %v1080_v37, %v1084_v38  ;;  %v1954_v44 = vcombine.high %v1081_v39, %v1085_v40 }
 0x248   :  { %v1714_v46 = vrot.slane %v1713_v45, 1 }
 0x249   :  { %1528 = vmatpush1.bf16.msra.mxu0 %v1973_v57  ;;  %v1101_v57 = vld [vmem:[#allocation6 + $0x1b8] sm:$0xff] }
 0x24a   :  { %v1715_v48 = vadd.f32 %v1714_v46, %v1713_v45  ;;  %1595 = vmatprep.subr.bf16.mxu0 %v1922_v3  ;;  %v1088_v45 = vld [vmem:[#allocation6 + $0x150] sm:$0xff]  ;;  %v1970_v62 = vcombine.high %v1097_v56, %v1101_v57  ;;  %v1967_v3 = vcombine.low %v1096_v54, %v1100_v55 }
 0x24b   :  { %v1092_v46 = vld [vmem:[#allocation6 + $0x170] sm:$0xff] }
 0x24c   :  { %v1716_v49 = vadd.f32 %v1715_v48, %v1707_v47  ;;  %v1089_v47 = vld [vmem:[#allocation6 + $0x158] sm:$0xff]  ;;  %v1960_v51 = vcombine.high %v1088_v45, %v1092_v46  ;;  %v1959_v58 = vcombine.low %v1088_v45, %v1092_v46 }
 0x24d   :  { %v1093_v48 = vld [vmem:[#allocation6 + $0x178] sm:$0xff] }
 0x24e   :  { %1718 = vst.msk [vmem:[#allocation3] sm:$0x1] %vm69_vm0, %v1716_v49  ;;  %v1951_v49 = vcombine.low %v1080_v37, %v1084_v38  ;;  %v1962_v53 = vcombine.high %v1089_v47, %v1093_v48  ;;  %v1961_v59 = vcombine.low %v1089_v47, %v1093_v48 }
 0x29e   :  { %v1686_v5 = vpop.permute.xlu0 %1685 }
 0x29f   :  { %v1688_v6 = vsel %vm970_vm2, %v2567_v52, %v1686_v5  ;;  %v1068_v52 = vld [vmem:[#allocation6 + $0xb0] sm:$0xff]  ;;  %v1724_v5 = vld [vmem:[#allocation3] sm:$0x1] }
 0x2a0   :  { %v1690_v7 = vsel %vm1689_vm4, %v1688_v6, 0.0  ;;  %v1936_v27 = vcombine.high %v1064_v22, %v1068_v52  ;;  %v1935_v33 = vcombine.low %v1064_v22, %v1068_v52  ;;  %v1976_v6 = vcombine.high %v1104_v63, %v1108_v0  ;;  %v1110_v52 = vld [vmem:[%s2644_s3] sm:$0xff] }
 0x2a1   :  { %1691 = vst [vmem:[%s2647_s6] sm:$0xff] %v1690_v7  ;;  %v1115_v24 = vrot.slane %v1110_v52, %v1114_v14 }
 0x2ff   :  { %v1040_v9 = vpop.f32.mrb[10].mxu0 }
 0x300   :  { %v1041_v10 = vadd.f32 %v1913_v8, %v1040_v9  ;;  %v2186_v11 = vpop.f32.mrb[11].mxu0  ;;  %v1725_v8 = vmul.f32 0.5, %v1724_v5  ;;  %v1975_v9 = vcombine.low %v1104_v63, %v1108_v0 }
 0x301   :  { %v1735_v11 = vld [vmem:[#allocation8 + $0x110] sm:$0xff] }
 0x302   :  { %v1044_v18 = vmax.f32 %v1041_v10, 0.0  ;;  %vm1726_vm5 = vcmp.lt.f32.partialorder %v1725_v8, 0.05  ;;  %v2246_v13 = vpack.c.bf16 %v1736_v12, %v1735_v11 }
 0x304   :  { %v2587_v19 = vpack.c.bf16 %v1044_v18, %v1044_v18  ;;  %v1727_v18 = vsel %vm1726_vm5, 0.0, %v2453_v17 }
 0x306   :  { %1505 = vmatmul.mubr.bf16.vlgmr.msra.gmra.mrb[12].mxu1 %v2587_v19  ;;  %1546 = vmatmul.mubr.bf16.vlgmr.msra.gmra.mrb[12].mxu0 %v2587_v19 }
 0x307   :  { %1555 = vmatpush1.bf16.msra.mxu1 %v1919_v1  ;;  %1596 = vmatpush1.bf16.msra.mxu0 %v1921_v2  ;;  %v1105_v1 = vld [vmem:[#allocation6 + $0x1d8] sm:$0xff] }
 0x308   :  { %1556 = vmatprep.subr.bf16.mxu1 %v1928_v20  ;;  %1597 = vmatprep.subr.bf16.mxu0 %v1930_v21  ;;  %v1109_v2 = vld [vmem:[#allocation6 + $0x1f8] sm:$0xff]  ;;  %v2597_v20 = vrot.slane %v1727_v18, %v1114_v14 }
 0x309   :  { %1586 = vmatprep.mubr.bf16.mxu1 %v2452_v4  ;;  %1627 = vmatprep.mubr.bf16.mxu0 %v2452_v4  ;;  %v1969_v4 = vcombine.low %v1097_v56, %v1101_v57  ;;  %v1978_v7 = vcombine.high %v1105_v1, %v1109_v2  ;;  %v1977_v10 = vcombine.low %v1105_v1, %v1109_v2  ;;  %v1734_v21 = vld [vmem:[#allocation2] sm:$0xff]  ;;  %v1130_v56 = vsub.s32 4, %v2576_v16 }
 0x30a   :  { %v1737_v22 = vmul.f32 %v1734_v21, %v2597_v20  ;;  %v1138_v57 = vsub.s32 6, %v2576_v16 }
 0x30b   :  { %1557 = vmatpush1.bf16.msra.mxu1 %v1927_v25  ;;  %1598 = vmatpush1.bf16.msra.mxu0 %v1929_v26 }
 0x30c   :  { %1558 = vmatprep.subr.bf16.mxu1 %v1936_v27  ;;  %1599 = vmatprep.subr.bf16.mxu0 %v1938_v28 }
 0x30f   :  { %1559 = vmatpush1.bf16.msra.mxu1 %v1935_v33  ;;  %1600 = vmatpush1.bf16.msra.mxu0 %v1937_v34 }
 0x310   :  { %1560 = vmatprep.subr.bf16.mxu1 %v1944_v35  ;;  %1601 = vmatprep.subr.bf16.mxu0 %v1946_v36 }
 0x313   :  { %1561 = vmatpush1.bf16.msra.mxu1 %v1943_v41  ;;  %1602 = vmatpush1.bf16.msra.mxu0 %v1945_v42 }
 0x314   :  { %1562 = vmatprep.subr.bf16.mxu1 %v1952_v43  ;;  %1603 = vmatprep.subr.bf16.mxu0 %v1954_v44 }
 0x317   :  { %1563 = vmatpush1.bf16.msra.mxu1 %v1951_v49  ;;  %1604 = vmatpush1.bf16.msra.mxu0 %v1953_v50 }
 0x318   :  { %1564 = vmatprep.subr.bf16.mxu1 %v1960_v51  ;;  %1605 = vmatprep.subr.bf16.mxu0 %v1962_v53 }
 0x31b   :  { %1565 = vmatpush1.bf16.msra.mxu1 %v1959_v58  ;;  %1606 = vmatpush1.bf16.msra.mxu0 %v1961_v59  ;;  %v1134_v58 = vsub.s32 5, %v2576_v16  ;;  %v1142_v59 = vsub.s32 7, %v2576_v16 }
 0x31c   :  { %1566 = vmatprep.subr.bf16.mxu1 %v1968_v60  ;;  %1607 = vmatprep.subr.bf16.mxu0 %v1970_v62  ;;  %v1131_v60 = vrot.slane %v1110_v52, %v1130_v56  ;;  %v1139_v62 = vrot.slane %v1110_v52, %v1138_v57 }
 0x31d   :  { %v1135_v0 = vrot.slane %v1110_v52, %v1134_v58  ;;  %v1143_v1 = vrot.slane %v1110_v52, %v1142_v59 }
 0x31f   :  { %1567 = vmatpush1.bf16.msra.mxu1 %v1967_v3  ;;  %1608 = vmatpush1.bf16.msra.mxu0 %v1969_v4 }
 0x320   :  { %1568 = vmatprep.subr.bf16.mxu1 %v1976_v6  ;;  %1609 = vmatprep.subr.bf16.mxu0 %v1978_v7 }
 0x323   :  { %1569 = vmatpush1.bf16.msra.mxu1 %v1975_v9  ;;  %1610 = vmatpush1.bf16.msra.mxu0 %v1977_v10 }
 0x324   :  { %2245 = vmatprep.subr.bf16.mxu1 %v2448_v15  ;;  %v1122_v15 = vsub.s32 2, %v2576_v16 }
 0x326   :  { %1587 = vmatmul.mubr.bf16.vlgmr.msra.gmra.mrb[16].mxu1 %v2587_v19  ;;  %1628 = vmatmul.mubr.bf16.vlgmr.msra.gmra.mrb[16].mxu0 %v2587_v19  ;;  %v1126_v19 = vsub.s32 3, %v2576_v16  ;;  %v1123_v25 = vrot.slane %v1110_v52, %v1122_v15 }
 0x327   :  { %2247 = vmatpush3.bf16.msra.mxu1 %v2246_v13  ;;  %2191 = vmatprep.mubr.msk.f32.mxu1 %vm2450_vm1, %v2449_v61  ;;  %v1119_v61 = vrot.slane %v1110_v52, %v1118_v23 }
 0x328   :  { %v1127_v26 = vrot.slane %v1110_v52, %v1126_v19 }
 0x32e   :  { %2192 = vmatmul.mubr.msk.f32.vlgmr.msra.gmra.mrb[10].mxu1 %vm970_vm2, %v1737_v22 }
 0x3d9   :  { %v1506_v27 = vpop.f32.mrb[12].mxu1  ;;  %v1547_v28 = vpop.f32.mrb[12].mxu0 }
 0x3da   :  { %v1507_v29 = vadd.f32 %v1506_v27, %v1115_v24  ;;  %v1548_v30 = vadd.f32 %v1547_v28, %v1123_v25  ;;  %v1508_v31 = vpop.f32.mrb[13].mxu1  ;;  %v1549_v32 = vpop.f32.mrb[13].mxu0  ;;  %v1980_v25 = vld [vmem:[#allocation8 + $0x140] ss:$0 sm:$0xff] }
 0x3db   :  { %v1509_v33 = vadd.f32 %v1508_v31, %v1119_v61  ;;  %v1550_v34 = vadd.f32 %v1549_v32, %v1127_v26  ;;  %v1510_v35 = vpop.f32.mrb[14].mxu1  ;;  %v1551_v36 = vpop.f32.mrb[14].mxu0 }
 0x3dc   :  { %v1636_v37 = vsub.f32 0.0, %v1507_v29  ;;  %v1638_v38 = vsub.f32 0.0, %v1548_v30  ;;  %v1511_v39 = vpop.f32.mrb[15].mxu1  ;;  %v1552_v40 = vpop.f32.mrb[15].mxu0 }
 0x3dd   :  { %v1637_v41 = vsub.f32 0.0, %v1509_v33  ;;  %v1639_v42 = vsub.f32 0.0, %v1550_v34 }
 0x3de   :  { %v1644_v43 = vmul.f32 1.442695, %v1636_v37  ;;  %v1648_v44 = vmul.f32 1.442695, %v1638_v38 }
 0x3df   :  { %v1646_v45 = vmul.f32 1.442695, %v1637_v41  ;;  %v1650_v46 = vmul.f32 1.442695, %v1639_v42 }
 0x3e0   :  { %2337 = vpow2.f32 %v1644_v43 }
 0x3e1   :  { %2339 = vpow2.f32 %v1648_v44 }
 0x3e2   :  { %2341 = vpow2.f32 %v1646_v45 }
 0x3e3   :  { %2343 = vpow2.f32 %v1650_v46 }
 0x3ea   :  { %v2338_v47 = vpop.eup %2337 }
 0x3eb   :  { %v2340_v48 = vpop.eup %2339  ;;  %v1660_v49 = vadd.f32 1.0, %v2338_v47 }
 0x3ec   :  { %v2342_v50 = vpop.eup %2341  ;;  %v1662_v51 = vadd.f32 1.0, %v2340_v48 }
 0x3ed   :  { %v2344_v53 = vpop.eup %2343  ;;  %2345 = vrcp.f32 %v1660_v49  ;;  %v1661_v54 = vadd.f32 1.0, %v2342_v50 }
 0x3ee   :  { %2347 = vrcp.f32 %v1662_v51  ;;  %v1663_v55 = vadd.f32 1.0, %v2344_v53 }
 0x3ef   :  { %2349 = vrcp.f32 %v1661_v54 }
 0x3f0   :  { %2351 = vrcp.f32 %v1663_v55 }
 0x3f7   :  { %v2346_v63 = vpop.eup %2345 }
 0x3f8   :  { %v2348_v2 = vpop.eup %2347  ;;  %1676 = vst [vmem:[%s2646_s5] sm:$0xff] %v2346_v63 }
 0x3f9   :  { %v2350_v3 = vpop.eup %2349  ;;  %1678 = vst [vmem:[%s2646_s5 + $0x10] sm:$0xff] %v2348_v2  ;;  %v1588_v4 = vpop.f32.mrb[16].mxu1 }
 0x3fa   :  { %v1629_v5 = vpop.f32.mrb[16].mxu0  ;;  %v2352_v6 = vpop.eup %2351  ;;  %1677 = vst [vmem:[%s2646_s5 + $0x8] sm:$0xff] %v2350_v3  ;;  %v1589_v16 = vadd.f32 %v1588_v4, %v1131_v60 }
 0x3fb   :  { %v1630_v7 = vadd.f32 %v1629_v5, %v1139_v62  ;;  %v1590_v8 = vpop.f32.mrb[17].mxu1  ;;  %v1631_v9 = vpop.f32.mrb[17].mxu0  ;;  %1679 = vst [vmem:[%s2646_s5 + $0x18] sm:$0xff] %v2352_v6 }
 0x3fc   :  { %v1591_v10 = vadd.f32 %v1590_v8, %v1135_v0  ;;  %v1632_v11 = vadd.f32 %v1631_v9, %v1143_v1  ;;  %v1592_v12 = vpop.f32.mrb[18].mxu1  ;;  %v1633_v13 = vpop.f32.mrb[18].mxu0  ;;  %v1640_v14 = vsub.f32 0.0, %v1589_v16 }
 0x3fd   :  { %v1642_v17 = vsub.f32 0.0, %v1630_v7  ;;  %v1593_v18 = vpop.f32.mrb[19].mxu1  ;;  %v1634_v21 = vpop.f32.mrb[19].mxu0 }
 0x3fe   :  { %v1641_v22 = vsub.f32 0.0, %v1591_v10  ;;  %v1643_v15 = vsub.f32 0.0, %v1632_v11  ;;  %v1652_v52 = vmul.f32 1.442695, %v1640_v14 }
 0x3ff   :  { %v1656_v23 = vmul.f32 1.442695, %v1642_v17 }
 0x400   :  { %v1654_v19 = vmul.f32 1.442695, %v1641_v22  ;;  %v1658_v24 = vmul.f32 1.442695, %v1643_v15  ;;  %2353 = vpow2.f32 %v1652_v52 }
 0x401   :  { %2355 = vpow2.f32 %v1656_v23  ;;  %v1812_v61 = vpop.f32.mrb[10].mxu1 }
 0x402   :  { %2357 = vpow2.f32 %v1654_v19  ;;  %v1813_v26 = vadd.f32 %v1980_v25, %v1812_v61  ;;  %v2193_v27 = vpop.f32.mrb[11].mxu1 }
 0x403   :  { %2359 = vpow2.f32 %v1658_v24 }
 0x404   :  { %1817 = vrot.lane.b32.xlu0 %v1813_v26, %s2451_s0 }
 0x40a   :  { %v2354_v28 = vpop.eup %2353 }
 0x40b   :  { %v2356_v29 = vpop.eup %2355  ;;  %v1664_v30 = vadd.f32 1.0, %v2354_v28 }
 0x40c   :  { %v2358_v31 = vpop.eup %2357  ;;  %v1666_v32 = vadd.f32 1.0, %v2356_v29 }
 0x40d   :  { %v2360_v33 = vpop.eup %2359  ;;  %2361 = vrcp.f32 %v1664_v30  ;;  %v1665_v34 = vadd.f32 1.0, %v2358_v31 }
 0x40e   :  { %2363 = vrcp.f32 %v1666_v32  ;;  %v1667_v35 = vadd.f32 1.0, %v2360_v33 }
 0x40f   :  { %2365 = vrcp.f32 %v1665_v34 }
 0x410   :  { %2367 = vrcp.f32 %v1667_v35 }
 0x417   :  { %v2362_v36 = vpop.eup %2361 }
 0x418   :  { %v2364_v37 = vpop.eup %2363  ;;  %1680 = vst [vmem:[%s2646_s5 + $0x20] sm:$0xff] %v2362_v36 }
 0x419   :  { %v2366_v38 = vpop.eup %2365  ;;  %1682 = vst [vmem:[%s2646_s5 + $0x30] sm:$0xff] %v2364_v37 }
 0x41a   :  { %v2368_v39 = vpop.eup %2367  ;;  %1681 = vst [vmem:[%s2646_s5 + $0x28] sm:$0xff] %v2366_v38 }
 0x41b   :  { %1683 = vst [vmem:[%s2646_s5 + $0x38] sm:$0xff] %v2368_v39 }
 0x476   :  { %v1818_v40 = vpop.permute.xlu0 %1817 }
 0x477   :  { %v1820_v41 = vsel %vm970_vm2, %v2597_v20, %v1818_v40 }
 0x478   :  { %v1822_v42 = vsel %vm1821_vm6, %v1820_v41, 0.0 }
 0x479   :  { %1823 = vst [vmem:[%s2648_s7] sm:$0xff] %v1822_v42 }
 0x47a   :  { %1836 = vsyncpa [#allocation5], 1 }
 0x47b   :  { %1837 = vsyncpa [#allocation7], 1 }

</bundles_post_ra>
